<compile_context>
chip_gen: v6e
topology: v6e:2x2x1
jax: 0.10.0
libtpu: 0.0.40
codegen_flags: <defaults>
</compile_context>

<pallas_src>
import functools

import jax
import jax.numpy as jnp
from jax.experimental import pallas as pl
from jax.experimental.pallas import tpu as pltpu


def _round_up(x, m):
    return (x + m - 1) // m * m


def _vmem_capacity_bytes():
    try:
        cap = getattr(pltpu.get_tpu_info(), "vmem_capacity_bytes", None)
        if cap:
            return int(cap)
    except Exception:
        pass
    return 64 * 1024 * 1024  # conservative fallback (v7x per-core VMEM)


def _fused_rgcn_kernel(sched_ref, h0_hbm, adj_in, w_ref, out_ref, *scratch,
                       tm, d_pad, n_layers, n_rel, nm, batch_t, adj_resident):
    """Fused multi-layer RGCN.  Grid = (L, R, dst_tiles), all sequential.

    sched_ref : SMEM (3*L*R*nm,) int32   [nnz | fetch_r | fetch_m] per grid step
    h0_hbm    : HBM  (Np, Dp) bf16       initial node features (staged once)
    adj_in    : HBM  (R, Np, Np) bf16    (resident path) | VMEM (TM, Np) block (streamed)
    w_ref     : VMEM (Dp, R*Dp) bf16     (batched T)     | (Dp, Dp) (per-relation T)
    out_ref   : VMEM (TM, Dp) f32        output tile (written on last layer/relation only)
    scratch   : h_cur (Np,Dp) bf16, t_buf bf16, acc (Np,Dp) f32 [, adj_vmem (R,Np,Np) bf16]
    """
    if adj_resident:
        h_cur, t_buf, acc, adj_vmem = scratch
    else:
        h_cur, t_buf, acc = scratch

    l = pl.program_id(0)
    r = pl.program_id(1)
    m = pl.program_id(2)

    row0 = pl.multiple_of(m * tm, tm)
    t_lin = (l * n_rel + r) * nm + m          # linear grid step
    nz = sched_ref[t_lin]                     # nonzero flag of this (r, m) block

    # One-time staging: h0 (and the whole normalized adjacency when it fits in
    # VMEM) is DMA'd exactly once instead of living as resident pipeline inputs.
    @pl.when(jnp.logical_and(l == 0, jnp.logical_and(r == 0, m == 0)))
    def _():
        pltpu.sync_copy(h0_hbm, h_cur)
        if adj_resident:
            pltpu.sync_copy(adj_in, adj_vmem)

    # Hoisted T = H @ W.  With batch_t, all relations are produced by a single
    # wide matmul once per layer (fills the 256-wide MXU on v6e/v7x).
    if batch_t:
        t_gate = jnp.logical_and(r == 0, m == 0)
    else:
        t_gate = m == 0

    @pl.when(t_gate)
    def _():
        t_buf[...] = jnp.dot(h_cur[...], w_ref[...],
                             preferred_element_type=jnp.float32).astype(t_buf.dtype)

    def tile_product():
        if adj_resident:
            a_blk = adj_vmem[r, pl.ds(row0, tm), :]
        else:
            a_blk = adj_in[...]
        if batch_t:
            col0 = pl.multiple_of(r * d_pad, d_pad)
            t_blk = t_buf[:, pl.ds(col0, d_pad)]
        else:
            t_blk = t_buf[...]
        return jnp.dot(a_blk, t_blk, preferred_element_type=jnp.float32)

    # First relation: assign (no acc read) / zero-fill; later relations accumulate.
    # Zero blocks are skipped on the MXU; in the streamed path their DMA was
    # already elided via the remapped index_map.
    @pl.when(jnp.logical_and(r == 0, nz > 0))
    def _():
        acc[pl.ds(row0, tm), :] = tile_product()

    @pl.when(jnp.logical_and(r == 0, nz == 0))
    def _():
        acc[pl.ds(row0, tm), :] = jnp.zeros((tm, d_pad), jnp.float32)

    @pl.when(jnp.logical_and(r > 0, nz > 0))
    def _():
        acc[pl.ds(row0, tm), :] += tile_product()

    # Mean is already folded into A_norm; after the last relation this dst tile
    # is complete -> relu and either feed the next layer or emit the output tile.
    last_rel = r == n_rel - 1
    last_layer = l == n_layers - 1

    @pl.when(jnp.logical_and(last_rel, jnp.logical_not(last_layer)))
    def _():
        h_cur[pl.ds(row0, tm), :] = jnp.maximum(
            acc[pl.ds(row0, tm), :], 0.0).astype(h_cur.dtype)

    @pl.when(jnp.logical_and(last_rel, last_layer))
    def _():
        out_ref[...] = jnp.maximum(acc[pl.ds(row0, tm), :], 0.0).astype(out_ref.dtype)


def _make_plan(N, D, L, R, force_streamed, force_per_rel_t):
    n_pad = _round_up(max(N, 8), 128)
    d_pad = _round_up(max(D, 128), 128)            # lane-dense feature dim
    cap = _vmem_capacity_bytes()                   # 64 MiB v7x, 128 MiB v5e/v6e
    budget = int(0.80 * cap)

    # dst tile: largest of {512, 256, 128} dividing n_pad whose streamed,
    # double-buffered (TM, Np) adjacency block stays a modest share of VMEM.
    tm = 128
    for cand in (512, 256):
        if n_pad % cand == 0 and 2 * cand * n_pad * 2 <= budget // 3:
            tm = cand
            break
    nm = n_pad // tm

    # T batched across relations when the (Np, R*Dp) bf16 buffer is cheap.
    batch_t = (not force_per_rel_t) and (n_pad * R * d_pad * 2 <= budget // 4)
    t_cols = R * d_pad if batch_t else d_pad

    base = (n_pad * d_pad * 2            # h_cur (bf16)
            + n_pad * t_cols * 2         # t_buf (bf16)
            + n_pad * d_pad * 4          # acc (f32)
            + 2 * tm * d_pad * 4         # output tile, double-buffered (f32)
            + 2 * d_pad * t_cols * 2)    # W block, double-buffered (bf16)

    adj_res_bytes = R * n_pad * n_pad * 2          # whole adjacency, single copy
    adj_resident = (not force_streamed) and (base + adj_res_bytes <= budget)
    adj_bytes = adj_res_bytes if adj_resident else 2 * tm * n_pad * 2

    vmem_limit = min(int(0.95 * cap),
                     max(32 * 1024 * 1024, int(1.25 * (base + adj_bytes)) + (4 << 20)))
    return (n_pad, d_pad, tm, nm, bool(batch_t), bool(adj_resident), int(vmem_limit))


@functools.partial(jax.jit, static_argnames=("plan",))
def _rgcn_forward_impl(h0, adj_counts, weights, *, plan):
    n_pad, d_pad, tm, nm, batch_t, adj_resident, vmem_limit = plan
    N, D = h0.shape
    L, R = weights.shape[0], weights.shape[1]
    n_steps = L * R * nm

    # Fold the mean (1 / max(in_degree, 1)) into the adjacency; cast to bf16
    # BEFORE padding so a padded f32 copy is never materialized.
    # (For a static graph this preprocessing can be hoisted out of the forward.)
    in_deg = adj_counts.sum(axis=(0, 2))                                      # [N]
    adj_norm = (adj_counts / jnp.maximum(in_deg, 1.0)[None, :, None]).astype(jnp.bfloat16)
    adj_b = jnp.zeros((R, n_pad, n_pad), jnp.bfloat16).at[:, :N, :N].set(adj_norm)

    h_b = jnp.zeros((n_pad, d_pad), jnp.bfloat16).at[:N, :D].set(h0.astype(jnp.bfloat16))
    w_b = jnp.zeros((L, R, d_pad, d_pad), jnp.bfloat16).at[:, :, :D, :D].set(
        weights.astype(jnp.bfloat16))
    if batch_t:
        # (L, Dp, R*Dp): W_all[:, r*Dp:(r+1)*Dp] == W_r  -> one wide matmul per layer.
        w_in = jnp.transpose(w_b, (0, 2, 1, 3)).reshape(L, d_pad, R * d_pad)
    else:
        w_in = w_b

    # Per grid step schedule (scalar prefetch, SMEM), flat int32:
    #   sched[t]        nonzero flag of the (r, m) adjacency block at step t
    #   sched[T + t]    relation block index to *fetch* at step t
    #   sched[2T + t]   dst-tile block index to *fetch* at step t
    # Zero blocks repeat the previous step's fetch indices, so the pipeline's
    # "same block => no copy" rule elides the adjacency DMA entirely.
    nnz_rm = (adj_b.reshape(R, nm, tm, n_pad) != 0).any(axis=(2, 3)).reshape(-1)
    grid_nnz = jnp.tile(nnz_rm, L)
    step = jnp.arange(n_steps, dtype=jnp.int32)
    last_nz = jax.lax.cummax(jnp.where(grid_nnz, step, -1), axis=0)
    fetch_lin = jnp.where(last_nz >= 0,
                          jnp.maximum(last_nz, 0) % (R * nm), 0).astype(jnp.int32)
    sched = jnp.concatenate([grid_nnz.astype(jnp.int32),
                             fetch_lin // nm, fetch_lin % nm])

    def adj_map(l, r, m, s):
        t = (l * R + r) * nm + m
        return (s[n_steps + t], s[2 * n_steps + t], 0)

    def out_map(l, r, m, s):
        writing = jnp.logical_and(l == L - 1, r == R - 1)
        return (jnp.where(writing, m, 0), 0)

    if adj_resident:
        adj_spec = pl.BlockSpec(memory_space=pl.ANY)       # staged once into VMEM scratch
    else:
        adj_spec = pl.BlockSpec((None, tm, n_pad), adj_map)

    if batch_t:
        w_spec = pl.BlockSpec((None, d_pad, R * d_pad), lambda l, r, m, s: (l, 0, 0))
        t_cols = R * d_pad
    else:
        w_spec = pl.BlockSpec((None, None, d_pad, d_pad), lambda l, r, m, s: (l, r, 0, 0))
        t_cols = d_pad

    scratch = [
        pltpu.VMEM((n_pad, d_pad), jnp.bfloat16),    # h_cur
        pltpu.VMEM((n_pad, t_cols), jnp.bfloat16),   # t_buf  (T = H @ W)
        pltpu.VMEM((n_pad, d_pad), jnp.float32),     # acc
    ]
    if adj_resident:
        scratch.append(pltpu.VMEM((R, n_pad, n_pad), jnp.bfloat16))   # adjacency, single copy

    flops = (L * 2 * n_pad * d_pad * R * d_pad        # H @ W (all relations)
             + L * R * 2 * n_pad * n_pad * d_pad)     # A_r @ T_r
    adj_reads = 1 if adj_resident else L
    bytes_accessed = (adj_reads * R * n_pad * n_pad * 2   # adjacency (bf16)
                      + L * R * d_pad * d_pad * 2         # weights
                      + n_pad * d_pad * 2                 # h0
                      + n_pad * d_pad * 4                 # output
                      + 3 * n_steps * 4)

    out = pl.pallas_call(
        functools.partial(_fused_rgcn_kernel, tm=tm, d_pad=d_pad, n_layers=L,
                          n_rel=R, nm=nm, batch_t=batch_t, adj_resident=adj_resident),
        out_shape=jax.ShapeDtypeStruct((n_pad, d_pad), jnp.float32),
        grid_spec=pltpu.PrefetchScalarGridSpec(
            num_scalar_prefetch=1,
            grid=(L, R, nm),
            in_specs=[
                pl.BlockSpec(memory_space=pl.ANY),   # h0 (staged once, not resident)
                adj_spec,
                w_spec,
            ],
            out_specs=pl.BlockSpec((tm, d_pad), out_map),
            scratch_shapes=scratch,
        ),
        compiler_params=pltpu.CompilerParams(
            # Layer fusion + cross-step scratch reuse -> all axes sequential.
            dimension_semantics=("arbitrary", "arbitrary", "arbitrary"),
            vmem_limit_bytes=vmem_limit,
        ),
        cost_estimate=pl.CostEstimate(flops=flops, transcendentals=0,
                                      bytes_accessed=bytes_accessed),
    )(sched, h_b, adj_b, w_in)

    return out[:N, :D]


def rgcn_forward(h0, adj_counts, weights, *, force_streamed=False, force_per_rel_t=False):
    """h0: [N, D] f32, adj_counts: [R, N, N] f32 edge counts (dst x src),
    weights: [L, R, D, D] f32.  Returns [N, D] f32 node features."""
    N, D = h0.shape
    L, R = int(weights.shape[0]), int(weights.shape[1])
    plan = _make_plan(int(N), int(D), L, R, force_streamed, force_per_rel_t)
    return _rgcn_forward_impl(h0, adj_counts, weights, plan=plan)


def xavier_uniform_relu(key, shape):
    """Deterministic stand-in for nn.init.xavier_uniform_(gain=calculate_gain('relu')).

    PyTorch fan computation for a (R, in, out) tensor: fan_in = in*out, fan_out = R*out.
    """
    r, fin, fout = shape
    gain = jnp.sqrt(2.0)
    bound = gain * jnp.sqrt(6.0 / (fin * fout + r * fout))
    return jax.random.uniform(key, shape, jnp.float32, -bound, bound)


if __name__ == "__main__":
    key = jax.random.PRNGKey(0)

    # Small synthetic graph consistent with the module's forward.
    N = 16          # nodes
    E = 48          # edges
    D = 32          # h_dim
    R = 5           # num_rels
    L = 2           # num_layers

    k_h, k_src, k_dst, k_rel, k_w = jax.random.split(key, 5)

    h0 = jax.random.normal(k_h, (N, D), jnp.float32)                 # g.ndata['h']
    src = jax.random.randint(k_src, (E,), 0, N)                      # edge sources
    dst = jax.random.randint(k_dst, (E,), 0, N)                      # edge destinations
    # Relation 0 gets no edges -> exercises the all-zero block path
    # (nnz gate, zero-fill on the first relation, DMA-skip remap).
    rel = jax.random.randint(k_rel, (E,), 1, R)                      # edges.data['rel_type']

    # Dense per-relation adjacency A[r, v, u] = #edges u->v with relation r.
    adj = jnp.zeros((R, N, N), jnp.float32).at[rel, dst, src].add(1.0)

    # Per-layer relation weights, deterministic xavier-uniform (relu gain).
    w_keys = jax.random.split(k_w, L)
    weights = jnp.stack([xavier_uniform_relu(w_keys[i], (R, D, D)) for i in range(L)])

    # Pure-JAX f32 reference (edge-wise bmm + scatter-mean + relu).
    in_deg = adj.sum(axis=(0, 2))
    inv_deg = 1.0 / jnp.maximum(in_deg, 1.0)
    h_ref = h0
    for li in range(L):
        msg = jnp.einsum("ed,edk->ek", h_ref[src], weights[li][rel])
        summed = jnp.zeros((N, D), jnp.float32).at[dst].add(msg)
        h_ref = jnp.maximum(summed * inv_deg[:, None], 0.0)

    # Path A: auto plan (adjacency resident in VMEM + batched T for this graph).
    out_a = rgcn_forward(h0, adj, weights)
    jax.block_until_ready(out_a)

    # Path B: forced streaming — per-(relation, dst-tile) adjacency blocks with
    # the scalar-prefetched remap that elides the DMA for all-zero blocks.
    out_b = rgcn_forward(h0, adj, weights, force_streamed=True)
    jax.block_until_ready(out_b)

    for out in (out_a, out_b):
        assert out.shape == (N, D)
        max_err = float(jnp.max(jnp.abs(out - h_ref)))
        # bf16 adjacency/H/W with f32 accumulation -> small rounding vs f32 reference.
        assert jnp.allclose(out, h_ref, atol=3e-2, rtol=3e-2), f"max abs err {max_err}"

    print("KERNEL_OK")
</pallas_src>

<mosaic_0001>
module attributes {stable_mosaic.version = 11 : i64} {
  func.func @_fused_rgcn_kernel(%arg0: i32, %arg1: i32, %arg2: i32, %arg3: memref<30xi32, #tpu.memory_space<smem>>, %arg4: memref<128x128xbf16, #tpu.memory_space<any>>, %arg5: memref<5x128x128xbf16, #tpu.memory_space<any>>, %arg6: memref<1x128x640xbf16, #tpu.memory_space<vmem>>, %arg7: memref<128x128xf32, #tpu.memory_space<vmem>>, %arg8: memref<128x128xbf16, #tpu.memory_space<vmem>>, %arg9: memref<128x640xbf16, #tpu.memory_space<vmem>>, %arg10: memref<128x128xf32, #tpu.memory_space<vmem>>, %arg11: memref<5x128x128xbf16, #tpu.memory_space<vmem>>) attributes {dimension_semantics = [#tpu.dimension_semantics<arbitrary>, #tpu.dimension_semantics<arbitrary>, #tpu.dimension_semantics<arbitrary>], iteration_bounds = array<i64: 2, 5, 1>, scalar_prefetch = 1 : i64, scratch_operands = 4 : i64, tpu.core_type = #tpu.core_type<tc>, window_params = [{}, {}, {transform_indices = @transform_2, window_bounds = array<i64: 1, 128, 640>}, {transform_indices = @transform_3, window_bounds = array<i64: 128, 128>}]} {
    %c128_i32 = arith.constant 128 : i32
    %0 = arith.muli %arg2, %c128_i32 : i32
    %1 = tpu.assume_multiple %0, 128 : i32
    %c5_i32 = arith.constant 5 : i32
    %2 = arith.muli %arg0, %c5_i32 : i32
    %3 = arith.addi %2, %arg1 : i32
    %c1_i32 = arith.constant 1 : i32
    %4 = arith.muli %3, %c1_i32 : i32
    %5 = arith.addi %4, %arg2 : i32
    %6 = arith.index_cast %5 : i32 to index
    %7 = memref.load %arg3[%6] : memref<30xi32, #tpu.memory_space<smem>>
    %c0_i32 = arith.constant 0 : i32
    %8 = arith.cmpi eq, %arg0, %c0_i32 : i32
    %c0_i32_0 = arith.constant 0 : i32
    %9 = arith.cmpi eq, %arg1, %c0_i32_0 : i32
    %c0_i32_1 = arith.constant 0 : i32
    %10 = arith.cmpi eq, %arg2, %c0_i32_1 : i32
    %11 = arith.andi %9, %10 : i1
    %12 = arith.andi %8, %11 : i1
    %13 = arith.extui %12 : i1 to i32
    %c0_i32_2 = arith.constant 0 : i32
    %14 = arith.cmpi ne, %13, %c0_i32_2 : i32
    scf.if %14 {
      "tpu.region"() ({
        %44 = tpu.sem_alloc : memref<!tpu.dma_semaphore, #tpu.memory_space<semaphore_mem>>
        tpu.enqueue_dma source(%arg4 : memref<128x128xbf16, #tpu.memory_space<any>>) target(%arg8 : memref<128x128xbf16, #tpu.memory_space<vmem>>) target_semaphore(%44 : memref<!tpu.dma_semaphore, #tpu.memory_space<semaphore_mem>>)
        tpu.wait_dma2 semaphore(%44 : memref<!tpu.dma_semaphore, #tpu.memory_space<semaphore_mem>>) src(%arg4 : memref<128x128xbf16, #tpu.memory_space<any>>) dst(%arg8 : memref<128x128xbf16, #tpu.memory_space<vmem>>)
        tpu.yield
      }) : () -> ()
      "tpu.region"() ({
        %44 = tpu.sem_alloc : memref<!tpu.dma_semaphore, #tpu.memory_space<semaphore_mem>>
        tpu.enqueue_dma source(%arg5 : memref<5x128x128xbf16, #tpu.memory_space<any>>) target(%arg11 : memref<5x128x128xbf16, #tpu.memory_space<vmem>>) target_semaphore(%44 : memref<!tpu.dma_semaphore, #tpu.memory_space<semaphore_mem>>)
        tpu.wait_dma2 semaphore(%44 : memref<!tpu.dma_semaphore, #tpu.memory_space<semaphore_mem>>) src(%arg5 : memref<5x128x128xbf16, #tpu.memory_space<any>>) dst(%arg11 : memref<5x128x128xbf16, #tpu.memory_space<vmem>>)
        tpu.yield
      }) : () -> ()
    } else {
    }
    %c0_i32_3 = arith.constant 0 : i32
    %15 = arith.cmpi eq, %arg1, %c0_i32_3 : i32
    %c0_i32_4 = arith.constant 0 : i32
    %16 = arith.cmpi eq, %arg2, %c0_i32_4 : i32
    %17 = arith.andi %15, %16 : i1
    %18 = arith.extui %17 : i1 to i32
    %c0_i32_5 = arith.constant 0 : i32
    %19 = arith.cmpi ne, %18, %c0_i32_5 : i32
    scf.if %19 {
      %c0 = arith.constant 0 : index
      %c0_18 = arith.constant 0 : index
      %44 = vector.load %arg8[%c0, %c0_18] : memref<128x128xbf16, #tpu.memory_space<vmem>>, vector<128x128xbf16>
      %c0_19 = arith.constant 0 : index
      %c0_20 = arith.constant 0 : index
      %c0_21 = arith.constant 0 : index
      %45 = vector.load %arg6[%c0_19, %c0_20, %c0_21] : memref<1x128x640xbf16, #tpu.memory_space<vmem>>, vector<1x128x640xbf16>
      %46 = vector.shape_cast %45 : vector<1x128x640xbf16> to vector<128x640xbf16>
      %cst = arith.constant dense<0.000000e+00> : vector<128x640xf32>
      %47 = tpu.matmul %44, %46, %cst {dimension_numbers = #tpu.dot_dimension_numbers<[1], [0], [0], [1], [0, 0, 1, 1], [], []>} : vector<128x128xbf16>, vector<128x640xbf16>, vector<128x640xf32> -> vector<128x640xf32>
      %48 = arith.truncf %47 : vector<128x640xf32> to vector<128x640xbf16>
      %c0_22 = arith.constant 0 : index
      %c0_23 = arith.constant 0 : index
      %49 = vector.load %arg9[%c0_22, %c0_23] : memref<128x640xbf16, #tpu.memory_space<vmem>>, vector<128x640xbf16>
      tpu.vector_store %arg9[%c0_22, %c0_23], %48 {strides = array<i32>} : memref<128x640xbf16, #tpu.memory_space<vmem>>, vector<128x640xbf16>,
    } else {
    }
    %c0_i32_6 = arith.constant 0 : i32
    %20 = arith.cmpi eq, %arg1, %c0_i32_6 : i32
    %c0_i32_7 = arith.constant 0 : i32
    %21 = arith.cmpi sgt, %7, %c0_i32_7 : i32
    %22 = arith.andi %20, %21 : i1
    %23 = arith.extui %22 : i1 to i32
    %c0_i32_8 = arith.constant 0 : i32
    %24 = arith.cmpi ne, %23, %c0_i32_8 : i32
    scf.if %24 {
      %44 = arith.index_cast %arg1 : i32 to index
      %45 = arith.index_cast %1 : i32 to index
      %c0 = arith.constant 0 : index
      %46 = vector.load %arg11[%44, %45, %c0] : memref<5x128x128xbf16, #tpu.memory_space<vmem>>, vector<1x128x128xbf16>
      %47 = vector.shape_cast %46 : vector<1x128x128xbf16> to vector<128x128xbf16>
      %c128_i32_18 = arith.constant 128 : i32
      %48 = arith.muli %arg1, %c128_i32_18 : i32
      %49 = tpu.assume_multiple %48, 128 : i32
      %c0_19 = arith.constant 0 : index
      %50 = arith.index_cast %49 : i32 to index
      %51 = vector.load %arg9[%c0_19, %50] : memref<128x640xbf16, #tpu.memory_space<vmem>>, vector<128x128xbf16>
      %cst = arith.constant dense<0.000000e+00> : vector<128x128xf32>
      %52 = tpu.matmul %47, %51, %cst {dimension_numbers = #tpu.dot_dimension_numbers<[1], [0], [0], [1], [0, 0, 1, 1], [], []>} : vector<128x128xbf16>, vector<128x128xbf16>, vector<128x128xf32> -> vector<128x128xf32>
      %53 = arith.index_cast %1 : i32 to index
      %c0_20 = arith.constant 0 : index
      %54 = vector.load %arg10[%53, %c0_20] : memref<128x128xf32, #tpu.memory_space<vmem>>, vector<128x128xf32>
      tpu.vector_store %arg10[%53, %c0_20], %52 {strides = array<i32>} : memref<128x128xf32, #tpu.memory_space<vmem>>, vector<128x128xf32>,
    } else {
    }
    %c0_i32_9 = arith.constant 0 : i32
    %25 = arith.cmpi eq, %arg1, %c0_i32_9 : i32
    %c0_i32_10 = arith.constant 0 : i32
    %26 = arith.cmpi eq, %7, %c0_i32_10 : i32
    %27 = arith.andi %25, %26 : i1
    %28 = arith.extui %27 : i1 to i32
    %c0_i32_11 = arith.constant 0 : i32
    %29 = arith.cmpi ne, %28, %c0_i32_11 : i32
    scf.if %29 {
      %cst = arith.constant 0.000000e+00 : f32
      %44 = vector.broadcast %cst : f32 to vector<128x128xf32>
      %45 = arith.index_cast %1 : i32 to index
      %c0 = arith.constant 0 : index
      %46 = vector.load %arg10[%45, %c0] : memref<128x128xf32, #tpu.memory_space<vmem>>, vector<128x128xf32>
      tpu.vector_store %arg10[%45, %c0], %44 {strides = array<i32>} : memref<128x128xf32, #tpu.memory_space<vmem>>, vector<128x128xf32>,
    } else {
    }
    %c0_i32_12 = arith.constant 0 : i32
    %30 = arith.cmpi sgt, %arg1, %c0_i32_12 : i32
    %c0_i32_13 = arith.constant 0 : i32
    %31 = arith.cmpi sgt, %7, %c0_i32_13 : i32
    %32 = arith.andi %30, %31 : i1
    %33 = arith.extui %32 : i1 to i32
    %c0_i32_14 = arith.constant 0 : i32
    %34 = arith.cmpi ne, %33, %c0_i32_14 : i32
    scf.if %34 {
      %44 = arith.index_cast %1 : i32 to index
      %c0 = arith.constant 0 : index
      %45 = vector.load %arg10[%44, %c0] : memref<128x128xf32, #tpu.memory_space<vmem>>, vector<128x128xf32>
      %46 = arith.index_cast %arg1 : i32 to index
      %47 = arith.index_cast %1 : i32 to index
      %c0_18 = arith.constant 0 : index
      %48 = vector.load %arg11[%46, %47, %c0_18] : memref<5x128x128xbf16, #tpu.memory_space<vmem>>, vector<1x128x128xbf16>
      %49 = vector.shape_cast %48 : vector<1x128x128xbf16> to vector<128x128xbf16>
      %c128_i32_19 = arith.constant 128 : i32
      %50 = arith.muli %arg1, %c128_i32_19 : i32
      %51 = tpu.assume_multiple %50, 128 : i32
      %c0_20 = arith.constant 0 : index
      %52 = arith.index_cast %51 : i32 to index
      %53 = vector.load %arg9[%c0_20, %52] : memref<128x640xbf16, #tpu.memory_space<vmem>>, vector<128x128xbf16>
      %cst = arith.constant dense<0.000000e+00> : vector<128x128xf32>
      %54 = tpu.matmul %49, %53, %cst {dimension_numbers = #tpu.dot_dimension_numbers<[1], [0], [0], [1], [0, 0, 1, 1], [], []>} : vector<128x128xbf16>, vector<128x128xbf16>, vector<128x128xf32> -> vector<128x128xf32>
      %55 = arith.addf %45, %54 : vector<128x128xf32>
      %56 = arith.index_cast %1 : i32 to index
      %c0_21 = arith.constant 0 : index
      %57 = vector.load %arg10[%56, %c0_21] : memref<128x128xf32, #tpu.memory_space<vmem>>, vector<128x128xf32>
      tpu.vector_store %arg10[%56, %c0_21], %55 {strides = array<i32>} : memref<128x128xf32, #tpu.memory_space<vmem>>, vector<128x128xf32>,
    } else {
    }
    %c4_i32 = arith.constant 4 : i32
    %35 = arith.cmpi eq, %arg1, %c4_i32 : i32
    %c1_i32_15 = arith.constant 1 : i32
    %36 = arith.cmpi eq, %arg0, %c1_i32_15 : i32
    %true = arith.constant true
    %37 = arith.xori %36, %true : i1
    %38 = arith.andi %35, %37 : i1
    %39 = arith.extui %38 : i1 to i32
    %c0_i32_16 = arith.constant 0 : i32
    %40 = arith.cmpi ne, %39, %c0_i32_16 : i32
    scf.if %40 {
      %44 = arith.index_cast %1 : i32 to index
      %c0 = arith.constant 0 : index
      %45 = vector.load %arg10[%44, %c0] : memref<128x128xf32, #tpu.memory_space<vmem>>, vector<128x128xf32>
      %cst = arith.constant 0.000000e+00 : f32
      %46 = vector.broadcast %cst : f32 to vector<128x128xf32>
      %47 = arith.maximumf %45, %46 : vector<128x128xf32>
      %48 = arith.truncf %47 : vector<128x128xf32> to vector<128x128xbf16>
      %49 = arith.index_cast %1 : i32 to index
      %c0_18 = arith.constant 0 : index
      %50 = vector.load %arg8[%49, %c0_18] : memref<128x128xbf16, #tpu.memory_space<vmem>>, vector<128x128xbf16>
      tpu.vector_store %arg8[%49, %c0_18], %48 {strides = array<i32>} : memref<128x128xbf16, #tpu.memory_space<vmem>>, vector<128x128xbf16>,
    } else {
    }
    %41 = arith.andi %35, %36 : i1
    %42 = arith.extui %41 : i1 to i32
    %c0_i32_17 = arith.constant 0 : i32
    %43 = arith.cmpi ne, %42, %c0_i32_17 : i32
    scf.if %43 {
      %44 = arith.index_cast %1 : i32 to index
      %c0 = arith.constant 0 : index
      %45 = vector.load %arg10[%44, %c0] : memref<128x128xf32, #tpu.memory_space<vmem>>, vector<128x128xf32>
      %cst = arith.constant 0.000000e+00 : f32
      %46 = vector.broadcast %cst : f32 to vector<128x128xf32>
      %47 = arith.maximumf %45, %46 : vector<128x128xf32>
      %c0_18 = arith.constant 0 : index
      %c0_19 = arith.constant 0 : index
      %48 = vector.load %arg7[%c0_18, %c0_19] : memref<128x128xf32, #tpu.memory_space<vmem>>, vector<128x128xf32>
      tpu.vector_store %arg7[%c0_18, %c0_19], %47 {strides = array<i32>} : memref<128x128xf32, #tpu.memory_space<vmem>>, vector<128x128xf32>,
    } else {
    }
    return
  }
  func.func @transform_2(%arg0: i32, %arg1: i32, %arg2: i32, %arg3: memref<30xi32, #tpu.memory_space<smem>>) -> (i32, i32, i32) {
    %c0_i32 = arith.constant 0 : i32
    %c0_i32_0 = arith.constant 0 : i32
    %c0_i32_1 = arith.constant 0 : i32
    return %arg0, %c0_i32, %c0_i32_0 : i32, i32, i32
  }
  func.func @transform_3(%arg0: i32, %arg1: i32, %arg2: i32, %arg3: memref<30xi32, #tpu.memory_space<smem>>) -> (i32, i32) {
    %c1_i32 = arith.constant 1 : i32
    %0 = arith.cmpi eq, %arg0, %c1_i32 : i32
    %c4_i32 = arith.constant 4 : i32
    %1 = arith.cmpi eq, %arg1, %c4_i32 : i32
    %2 = arith.andi %0, %1 : i1
    %c0_i32 = arith.constant 0 : i32
    %3 = arith.select %2, %arg2, %c0_i32 : i32
    %c0_i32_0 = arith.constant 0 : i32
    %c0_i32_1 = arith.constant 0 : i32
    return %3, %c0_i32_0 : i32, i32
  }
}

</mosaic_0001>

<bundles_post_ra>
// kernel: tile.6
= control target key start
LH: loop header
LB: loop body
LE: loop exit
PB: predicated region body
PF: predicated region fallthrough
CT: control target
= control target key end

     0   :  { %v14_v2 = vmov 0   ;;  %s31_s0 = inlined_call_operand.vmem [shape: pred[5], index: 0, kind: input, shape index: {}]   ;;  %s32_s1 = inlined_call_operand.vmem [shape: pred[2,5], index: 1, kind: output, shape index: {}]  }
   0x1   :  { %v4_v0 = vld [vmem:[%s31_s0] ss:$0 sm:$0xff] }
   0x2   :  { %v7_v1 = vand.u32 255, %v4_v0 }
   0x4   :  { %v8_v3 = vpack.c.b16 %v14_v2, %v7_v1 }
   0x6   :  { %v9_v4 = vpack.c.b8 %v14_v2, %v8_v3 }
   0x8   :  { %12 = vst [vmem:[%s32_s1] sm:$0x1] %v9_v4 }

// kernel: _rgcn_forward_impl.1
= control target key start
LH: loop header
LB: loop body
LE: loop exit
PB: predicated region body
PF: predicated region fallthrough
CT: control target
= control target key end

     0   :  { %s3281_s0 = inlined_call_operand.vmem [shape: s32[30], index: 0, kind: input, shape index: {}]   ;;  %s3282_s1 = inlined_call_operand.vmem [shape: bf16[128,128], index: 1, kind: input, shape index: {}]   ;;  %s3283_s2 = inlined_call_operand.vmem [shape: bf16[5,128,128], index: 2, kind: input, shape index: {}]   ;;  %s3284_s3 = inlined_call_operand.vmem [shape: bf16[2,128,640], index: 3, kind: input, shape index: {}]   ;;  %s3285_s4 = inlined_call_operand.vmem [shape: f32[128,128], index: 4, kind: output, shape index: {}]  }
   0x1   :  { %s9_s17 = sshll.u32 %s3281_s0, 4  ;;  %s10_s17 = int_to_ptr.vmem [resolvable:$true] %s9_s17 }
   0x2   :  { %s2804_s18 = scalar_lea.vmem %s10_s17, 16  ;;  %p2809_p1 = scmp.lt.s32.totalorder %s10_s17, %s10_s17 }
   0x3   :  { %p2805_p0 = scmp.ne.s32.totalorder %s10_s17, %s2804_s18  ;;  %p2810_p2 = scmp.lt.s32.totalorder %s2804_s18, %s2804_s18 }
   0x5   :  { %p2811_p3 = por %p2810_p2, %p2809_p1 }
   0x7   :  { %p2812_p4 = pnand %p2811_p3, %p2805_p0 }
   0x9   :  { %2815 = shalt.err (!%p2812_p4)  }
   0xa   :  { %s2862_s19 = smov [#allocation7]  }
   0xb   :  { %12 = dma.vmem_to_smem %s10_s17, 16, %s2862_s19, [#allocation6] }
   0xc   :  { %2836 = dma.done.wait [#allocation6], 16 }
   0xd   :  { %2837 = vsyncadd [#allocation6], 4294967280 }
   0xe   :  { %14 = sfence }
   0xf   :  { %s2893_s20 = smov 0   ;;  %s2895_s21 = smov 0  }
  0x10   :  { %s2897_s22 = smov 0   ;;  %s2899_s0 = smov 0  }
  0x11   :  { %s2901_s23 = smov 0  }
  0x12 LB: > { %s35_s24 = sadd.s32 1, %s2852_s22  ;;  %s39_s25 = sadd.s32 1, %s2856_s0  ;;  %s2860_s23 = sphi %s2901_s23, %s20_s23   ;;  %s2856_s0 = sphi %s2899_s0, %s3289_s0   ;;  %s2852_s22 = sphi %s2897_s22, %s3288_s22   ;;  %s2848_s21 = sphi %s2895_s21, %s3287_s21   ;;  %s2844_s20 = sphi %s2893_s20, %s3286_s20  }
  0x13   : > { %p37_p5 = scmp.ge.s32.totalorder %s35_s24, 5  ;;  %p2199_p6 = scmp.ge.s32.totalorder %s2860_s23, 1 }
  0x14   : > { %p125_p7 = scmp.lt.s32.totalorder %s2860_s23, 11 }
  0x15   : > { %s3291_s24 = smov (%p37_p5, %s35_s24), 0  ;;  %s3293_s25 = smov (!%p37_p5, %s39_s25), %s2856_s0 }
  0x16   : > { %p126_p8 = pnand %p2199_p6, %p125_p7  ;;  %p41_p9 = scmp.ge.s32.totalorder %s3293_s25, 2 }
  0x17   : > { %p150_p10 = scmp.lt.s32.totalorder (!%p126_p8), %s2848_s21, 1  ;;  %s173_s26 = smul.u32 (!%p126_p8), 5, %s2848_s21 }
  0x18   : > { %s3295_s25 = smov (%p41_p9, %s3293_s25), 0  ;;  %129 = sbr.rel (%p126_p8) target bundleno = 936 (0x3a8), region = 24 }
  0x19   : > { %p177_p11 = scmp.eq.s32.totalorder (!%p126_p8), %s2848_s21, 0  ;;  %p178_p12 = scmp.eq.s32.totalorder (!%p126_p8), %s2844_s20, 0 }
  0x1a   : > { %s174_s28 = sadd.s32 (!%p126_p8), %s2844_s20, %s173_s26 }
  0x1b   : > { %p182_p13 = pnand (!%p126_p8), %p178_p12, %p177_p11  ;;  %s2935_s30 = sld [smem:[#allocation7 + %s174_s28]] (!%p126_p8) }
  0x1d   : > { %s151_s27 = scalar_select %p150_p10, %s2848_s21, 1 }
  0x1e   : > { %185 = sbr.rel (%p182_p13) target bundleno = 67 (0x43), region = 28 }
  0x1f   : > { %s2664_s29 = smul.u32 320, %s151_s27 }
  0x21   : > { %s2940_s7 = scalar_lea.vmem %s3284_s3, %s2664_s29 }
  0x23   : > { %v219_v0 = vld [vmem:[%s3282_s1] sm:$0xff]  ;;  %v221_v1 = vld [vmem:[%s3282_s1 + $0x8] sm:$0xff]  ;;  %v223_v2 = vld [vmem:[%s3282_s1 + $0x10] sm:$0xff] }
  0x24   : > { %220 = vst [vmem:[#allocation2] sm:$0xff] %v219_v0  ;;  %222 = vst [vmem:[#allocation2 + $0x8] sm:$0xff] %v221_v1  ;;  %v225_v3 = vld [vmem:[%s3282_s1 + $0x18] sm:$0xff]  ;;  %v227_v4 = vld [vmem:[%s3282_s1 + $0x20] sm:$0xff] }
  0x25   : > { %224 = vst [vmem:[#allocation2 + $0x10] sm:$0xff] %v223_v2  ;;  %v229_v5 = vld [vmem:[%s3282_s1 + $0x28] sm:$0xff]  ;;  %226 = vst [vmem:[#allocation2 + $0x18] sm:$0xff] %v225_v3  ;;  %v231_v6 = vld [vmem:[%s3282_s1 + $0x30] sm:$0xff] }
  0x26   : > { %228 = vst [vmem:[#allocation2 + $0x20] sm:$0xff] %v227_v4  ;;  %230 = vst [vmem:[#allocation2 + $0x28] sm:$0xff] %v229_v5  ;;  %v233_v7 = vld [vmem:[%s3282_s1 + $0x38] sm:$0xff] }
  0x27   : > { %232 = vst [vmem:[#allocation2 + $0x30] sm:$0xff] %v231_v6  ;;  %234 = vst [vmem:[#allocation2 + $0x38] sm:$0xff] %v233_v7 }
  0x28   : > { %242 = vsyncadd [#allocation8], 1024 }
  0x29   : > { %2838 = dma.done.wait [#allocation8], 1024 }
  0x2a   : > { %2839 = vsyncadd [#allocation8], 4294966272 }
  0x2b   : > { %v280_v8 = vld [vmem:[%s3283_s2] sm:$0xff]  ;;  %v282_v9 = vld [vmem:[%s3283_s2 + $0x8] sm:$0xff]  ;;  %v284_v10 = vld [vmem:[%s3283_s2 + $0x10] sm:$0xff] }
  0x2c   : > { %281 = vst [vmem:[#allocation5] sm:$0xff] %v280_v8  ;;  %283 = vst [vmem:[#allocation5 + $0x8] sm:$0xff] %v282_v9  ;;  %v286_v11 = vld [vmem:[%s3283_s2 + $0x18] sm:$0xff]  ;;  %v288_v12 = vld [vmem:[%s3283_s2 + $0x20] sm:$0xff] }
  0x2d   : > { %285 = vst [vmem:[#allocation5 + $0x10] sm:$0xff] %v284_v10  ;;  %v290_v13 = vld [vmem:[%s3283_s2 + $0x28] sm:$0xff]  ;;  %287 = vst [vmem:[#allocation5 + $0x18] sm:$0xff] %v286_v11  ;;  %v292_v14 = vld [vmem:[%s3283_s2 + $0x30] sm:$0xff] }
  0x2e   : > { %289 = vst [vmem:[#allocation5 + $0x20] sm:$0xff] %v288_v12  ;;  %291 = vst [vmem:[#allocation5 + $0x28] sm:$0xff] %v290_v13  ;;  %v294_v15 = vld [vmem:[%s3283_s2 + $0x38] sm:$0xff]  ;;  %v296_v16 = vld [vmem:[%s3283_s2 + $0x40] sm:$0xff] }
  0x2f   : > { %293 = vst [vmem:[#allocation5 + $0x30] sm:$0xff] %v292_v14  ;;  %295 = vst [vmem:[#allocation5 + $0x38] sm:$0xff] %v294_v15  ;;  %v298_v17 = vld [vmem:[%s3283_s2 + $0x48] sm:$0xff]  ;;  %v300_v18 = vld [vmem:[%s3283_s2 + $0x50] sm:$0xff] }
  0x30   : > { %297 = vst [vmem:[#allocation5 + $0x40] sm:$0xff] %v296_v16  ;;  %v302_v19 = vld [vmem:[%s3283_s2 + $0x58] sm:$0xff]  ;;  %299 = vst [vmem:[#allocation5 + $0x48] sm:$0xff] %v298_v17  ;;  %v304_v20 = vld [vmem:[%s3283_s2 + $0x60] sm:$0xff] }
  0x31   : > { %301 = vst [vmem:[#allocation5 + $0x50] sm:$0xff] %v300_v18  ;;  %303 = vst [vmem:[#allocation5 + $0x58] sm:$0xff] %v302_v19  ;;  %v306_v21 = vld [vmem:[%s3283_s2 + $0x68] sm:$0xff]  ;;  %v308_v22 = vld [vmem:[%s3283_s2 + $0x70] sm:$0xff] }
  0x32   : > { %305 = vst [vmem:[#allocation5 + $0x60] sm:$0xff] %v304_v20  ;;  %307 = vst [vmem:[#allocation5 + $0x68] sm:$0xff] %v306_v21  ;;  %v310_v23 = vld [vmem:[%s3283_s2 + $0x78] sm:$0xff]  ;;  %v312_v24 = vld [vmem:[%s3283_s2 + $0x80] sm:$0xff] }
  0x33   : > { %309 = vst [vmem:[#allocation5 + $0x70] sm:$0xff] %v308_v22  ;;  %v314_v25 = vld [vmem:[%s3283_s2 + $0x88] sm:$0xff]  ;;  %311 = vst [vmem:[#allocation5 + $0x78] sm:$0xff] %v310_v23  ;;  %v316_v26 = vld [vmem:[%s3283_s2 + $0x90] sm:$0xff] }
  0x34   : > { %313 = vst [vmem:[#allocation5 + $0x80] sm:$0xff] %v312_v24  ;;  %315 = vst [vmem:[#allocation5 + $0x88] sm:$0xff] %v314_v25  ;;  %v318_v27 = vld [vmem:[%s3283_s2 + $0x98] sm:$0xff]  ;;  %v320_v28 = vld [vmem:[%s3283_s2 + $0xa0] sm:$0xff] }
  0x35   : > { %317 = vst [vmem:[#allocation5 + $0x90] sm:$0xff] %v316_v26  ;;  %319 = vst [vmem:[#allocation5 + $0x98] sm:$0xff] %v318_v27  ;;  %v322_v29 = vld [vmem:[%s3283_s2 + $0xa8] sm:$0xff]  ;;  %v324_v30 = vld [vmem:[%s3283_s2 + $0xb0] sm:$0xff] }
  0x36   : > { %321 = vst [vmem:[#allocation5 + $0xa0] sm:$0xff] %v320_v28  ;;  %v326_v31 = vld [vmem:[%s3283_s2 + $0xb8] sm:$0xff]  ;;  %323 = vst [vmem:[#allocation5 + $0xa8] sm:$0xff] %v322_v29  ;;  %v328_v32 = vld [vmem:[%s3283_s2 + $0xc0] sm:$0xff] }
  0x37   : > { %325 = vst [vmem:[#allocation5 + $0xb0] sm:$0xff] %v324_v30  ;;  %327 = vst [vmem:[#allocation5 + $0xb8] sm:$0xff] %v326_v31  ;;  %v330_v33 = vld [vmem:[%s3283_s2 + $0xc8] sm:$0xff]  ;;  %v332_v34 = vld [vmem:[%s3283_s2 + $0xd0] sm:$0xff] }
  0x38   : > { %329 = vst [vmem:[#allocation5 + $0xc0] sm:$0xff] %v328_v32  ;;  %331 = vst [vmem:[#allocation5 + $0xc8] sm:$0xff] %v330_v33  ;;  %v334_v35 = vld [vmem:[%s3283_s2 + $0xd8] sm:$0xff]  ;;  %v336_v36 = vld [vmem:[%s3283_s2 + $0xe0] sm:$0xff] }
  0x39   : > { %333 = vst [vmem:[#allocation5 + $0xd0] sm:$0xff] %v332_v34  ;;  %v338_v37 = vld [vmem:[%s3283_s2 + $0xe8] sm:$0xff]  ;;  %335 = vst [vmem:[#allocation5 + $0xd8] sm:$0xff] %v334_v35  ;;  %v340_v38 = vld [vmem:[%s3283_s2 + $0xf0] sm:$0xff] }
  0x3a   : > { %337 = vst [vmem:[#allocation5 + $0xe0] sm:$0xff] %v336_v36  ;;  %339 = vst [vmem:[#allocation5 + $0xe8] sm:$0xff] %v338_v37  ;;  %v342_v39 = vld [vmem:[%s3283_s2 + $0xf8] sm:$0xff]  ;;  %v344_v40 = vld [vmem:[%s3283_s2 + $0x100] sm:$0xff] }
  0x3b   : > { %341 = vst [vmem:[#allocation5 + $0xf0] sm:$0xff] %v340_v38  ;;  %343 = vst [vmem:[#allocation5 + $0xf8] sm:$0xff] %v342_v39  ;;  %v346_v41 = vld [vmem:[%s3283_s2 + $0x108] sm:$0xff]  ;;  %v348_v42 = vld [vmem:[%s3283_s2 + $0x110] sm:$0xff] }
  0x3c   : > { %345 = vst [vmem:[#allocation5 + $0x100] sm:$0xff] %v344_v40  ;;  %v350_v43 = vld [vmem:[%s3283_s2 + $0x118] sm:$0xff]  ;;  %347 = vst [vmem:[#allocation5 + $0x108] sm:$0xff] %v346_v41  ;;  %v352_v44 = vld [vmem:[%s3283_s2 + $0x120] sm:$0xff] }
  0x3d   : > { %349 = vst [vmem:[#allocation5 + $0x110] sm:$0xff] %v348_v42  ;;  %351 = vst [vmem:[#allocation5 + $0x118] sm:$0xff] %v350_v43  ;;  %v354_v45 = vld [vmem:[%s3283_s2 + $0x128] sm:$0xff]  ;;  %v356_v46 = vld [vmem:[%s3283_s2 + $0x130] sm:$0xff] }
  0x3e   : > { %353 = vst [vmem:[#allocation5 + $0x120] sm:$0xff] %v352_v44  ;;  %355 = vst [vmem:[#allocation5 + $0x128] sm:$0xff] %v354_v45  ;;  %v358_v47 = vld [vmem:[%s3283_s2 + $0x138] sm:$0xff] }
  0x3f   : > { %357 = vst [vmem:[#allocation5 + $0x130] sm:$0xff] %v356_v46  ;;  %359 = vst [vmem:[#allocation5 + $0x138] sm:$0xff] %v358_v47 }
  0x40   : > { %367 = vsyncadd [#allocation10], 5120 }
  0x41   : > { %2840 = dma.done.wait [#allocation10], 5120 }
  0x42   : > { %2841 = vsyncadd [#allocation10], 4294962176 }
  0x43 PF: > { %374 = sbr.rel (!%p178_p12) target bundleno = 375 (0x177), region = 102  ;;  %v2708_v48 = vld [vmem:[%s2940_s7 + $0x11c] ss:$20 sps:$4 sm:$0xff] (%p178_p12)   ;;  %v2710_v49 = vld [vmem:[%s2940_s7 + $0x124] ss:$20 sps:$4 sm:$0xff] (%p178_p12)   ;;  %v2863_v50 = vmov (%p178_p12), 0  }
  0x44   : > { %727 = vmatprep.mubr.bf16.mxu0 (%p178_p12), %v2863_v50  ;;  %840 = vmatprep.mubr.bf16.mxu1 (%p178_p12), %v2863_v50  ;;  %v2712_v51 = vld [vmem:[%s2940_s7 + $0x118] ss:$20 sps:$4 sm:$0xff] (%p178_p12)   ;;  %v2713_v52 = vld [vmem:[%s2940_s7 + $0x120] ss:$20 sps:$4 sm:$0xff] (%p178_p12)   ;;  %v2716_v54 = vld [vmem:[%s2940_s7 + $0xfc] ss:$20 sps:$4 sm:$0xff] (%p178_p12)  }
  0x45   : > { %695 = vmatprep.subr.bf16.mxu0 (%p178_p12), %v2708_v48  ;;  %808 = vmatprep.subr.bf16.mxu1 (%p178_p12), %v2710_v49  ;;  %v2714_v53 = vld [vmem:[%s2940_s7 + $0xf4] ss:$20 sps:$4 sm:$0xff] (%p178_p12)   ;;  %v2718_v55 = vld [vmem:[%s2940_s7 + $0xf0] ss:$20 sps:$4 sm:$0xff] (%p178_p12)   ;;  %v2719_v56 = vld [vmem:[%s2940_s7 + $0xf8] ss:$20 sps:$4 sm:$0xff] (%p178_p12)  }
  0x46   : > { %696 = vmatpush1.bf16.msra.mxu0 (%p178_p12), %v2712_v51  ;;  %809 = vmatpush1.bf16.msra.mxu1 (%p178_p12), %v2713_v52  ;;  %v2720_v57 = vld [vmem:[%s2940_s7 + $0xcc] ss:$20 sps:$4 sm:$0xff] (%p178_p12)   ;;  %v2722_v58 = vld [vmem:[%s2940_s7 + $0xd4] ss:$20 sps:$4 sm:$0xff] (%p178_p12)   ;;  %v2725_v60 = vld [vmem:[%s2940_s7 + $0xd0] ss:$20 sps:$4 sm:$0xff] (%p178_p12)  }
  0x47   : > { %697 = vmatprep.subr.bf16.mxu0 (%p178_p12), %v2714_v53  ;;  %810 = vmatprep.subr.bf16.mxu1 (%p178_p12), %v2716_v54  ;;  %v2724_v59 = vld [vmem:[%s2940_s7 + $0xc8] ss:$20 sps:$4 sm:$0xff] (%p178_p12)   ;;  %v2726_v61 = vld [vmem:[%s2940_s7 + $0xa4] ss:$20 sps:$4 sm:$0xff] (%p178_p12)   ;;  %v2728_v62 = vld [vmem:[%s2940_s7 + $0xac] ss:$20 sps:$4 sm:$0xff] (%p178_p12)  }
  0x48   : > { %v2730_v63 = vld [vmem:[%s2940_s7 + $0xa0] ss:$20 sps:$4 sm:$0xff]   ;;  %v2731_v0 = vld [vmem:[%s2940_s7 + $0xa8] ss:$20 sps:$4 sm:$0xff]   ;;  %v2734_v2 = vld [vmem:[%s2940_s7 + $0x84] ss:$20 sps:$4 sm:$0xff]  }
  0x49   : > { %v2732_v1 = vld [vmem:[%s2940_s7 + $0x7c] ss:$20 sps:$4 sm:$0xff]   ;;  %v2736_v3 = vld [vmem:[%s2940_s7 + $0x78] ss:$20 sps:$4 sm:$0xff]   ;;  %v2737_v4 = vld [vmem:[%s2940_s7 + $0x80] ss:$20 sps:$4 sm:$0xff]  }
  0x4a   : > { %698 = vmatpush1.bf16.msra.mxu0 %v2718_v55  ;;  %811 = vmatpush1.bf16.msra.mxu1 %v2719_v56  ;;  %v2738_v5 = vld [vmem:[%s2940_s7 + $0x54] ss:$20 sps:$4 sm:$0xff]   ;;  %v2740_v6 = vld [vmem:[%s2940_s7 + $0x5c] ss:$20 sps:$4 sm:$0xff]   ;;  %v2743_v8 = vld [vmem:[%s2940_s7 + $0x58] ss:$20 sps:$4 sm:$0xff]  }
  0x4b   : > { %699 = vmatprep.subr.bf16.mxu0 %v2720_v57  ;;  %812 = vmatprep.subr.bf16.mxu1 %v2722_v58  ;;  %v2742_v7 = vld [vmem:[%s2940_s7 + $0x50] ss:$20 sps:$4 sm:$0xff]   ;;  %v2744_v9 = vld [vmem:[%s2940_s7 + $0x2c] ss:$20 sps:$4 sm:$0xff]   ;;  %v2746_v10 = vld [vmem:[%s2940_s7 + $0x34] ss:$20 sps:$4 sm:$0xff]  }
  0x4c   : > { %v2748_v11 = vld [vmem:[%s2940_s7 + $0x28] ss:$20 sps:$4 sm:$0xff]   ;;  %v2749_v12 = vld [vmem:[%s2940_s7 + $0x30] ss:$20 sps:$4 sm:$0xff]   ;;  %v2752_v14 = vld [vmem:[%s2940_s7 + $0xc] ss:$20 sps:$4 sm:$0xff]  }
  0x4d   : > { %v2750_v13 = vld [vmem:[%s2940_s7 + $0x4] ss:$20 sps:$4 sm:$0xff]   ;;  %v2754_v15 = vld [vmem:[%s2940_s7] ss:$20 sps:$4 sm:$0xff]   ;;  %v2755_v16 = vld [vmem:[%s2940_s7 + $0x8] ss:$20 sps:$4 sm:$0xff]  }
  0x4e   : > { %700 = vmatpush1.bf16.msra.mxu0 %v2724_v59  ;;  %813 = vmatpush1.bf16.msra.mxu1 %v2725_v60  ;;  %v2757_v17 = vld [vmem:[%s2940_s7 + $0x128] ss:$20 sps:$4 sm:$0xff]   ;;  %v3123_v18 = vld [vmem:[#allocation2] sm:$0xff]   ;;  %v2761_v20 = vld [vmem:[%s2940_s7 + $0xd8] ss:$20 sps:$4 sm:$0xff]  }
  0x4f   : > { %701 = vmatprep.subr.bf16.mxu0 %v2726_v61  ;;  %814 = vmatprep.subr.bf16.mxu1 %v2728_v62  ;;  %v2759_v19 = vld [vmem:[%s2940_s7 + $0x100] ss:$20 sps:$4 sm:$0xff]   ;;  %v3131_v21 = vld [vmem:[#allocation2 + $0x8] sm:$0xff]   ;;  %v2763_v22 = vld [vmem:[%s2940_s7 + $0xb0] ss:$20 sps:$4 sm:$0xff]  }
  0x50   : > { %v2765_v23 = vld [vmem:[%s2940_s7 + $0x88] ss:$20 sps:$4 sm:$0xff]   ;;  %v2760_v24 = vld [vmem:[#allocation2 + $0x10] sm:$0xff]   ;;  %v2769_v26 = vld [vmem:[%s2940_s7 + $0x38] ss:$20 sps:$4 sm:$0xff]  }
  0x51   : > { %v2767_v25 = vld [vmem:[%s2940_s7 + $0x60] ss:$20 sps:$4 sm:$0xff]   ;;  %v2762_v27 = vld [vmem:[#allocation2 + $0x18] sm:$0xff]   ;;  %v2771_v28 = vld [vmem:[%s2940_s7 + $0x10] ss:$20 sps:$4 sm:$0xff]  }
  0x52   : > { %702 = vmatpush1.bf16.msra.mxu0 %v2730_v63  ;;  %815 = vmatpush1.bf16.msra.mxu1 %v2731_v0  ;;  %v2764_v29 = vld [vmem:[#allocation2 + $0x20] sm:$0xff]   ;;  %v2766_v30 = vld [vmem:[#allocation2 + $0x28] sm:$0xff]   ;;  %v2768_v31 = vld [vmem:[#allocation2 + $0x30] sm:$0xff]  }
  0x53   : > { %703 = vmatprep.subr.bf16.mxu0 %v2732_v1  ;;  %816 = vmatprep.subr.bf16.mxu1 %v2734_v2  ;;  %v2770_v32 = vld [vmem:[#allocation2 + $0x38] sm:$0xff]  }
  0x56   : > { %704 = vmatpush1.bf16.msra.mxu0 %v2736_v3  ;;  %817 = vmatpush1.bf16.msra.mxu1 %v2737_v4 }
  0x57   : > { %705 = vmatprep.subr.bf16.mxu0 %v2738_v5  ;;  %818 = vmatprep.subr.bf16.mxu1 %v2740_v6 }
  0x5a   : > { %706 = vmatpush1.bf16.msra.mxu0 %v2742_v7  ;;  %819 = vmatpush1.bf16.msra.mxu1 %v2743_v8 }
  0x5b   : > { %707 = vmatprep.subr.bf16.mxu0 %v2744_v9  ;;  %820 = vmatprep.subr.bf16.mxu1 %v2746_v10 }
  0x5e   : > { %708 = vmatpush1.bf16.msra.mxu0 %v2748_v11  ;;  %821 = vmatpush1.bf16.msra.mxu1 %v2749_v12 }
  0x5f   : > { %709 = vmatprep.subr.bf16.mxu0 %v2750_v13  ;;  %822 = vmatprep.subr.bf16.mxu1 %v2752_v14 }
  0x62   : > { %710 = vmatpush1.bf16.msra.mxu0 %v2754_v15  ;;  %823 = vmatpush1.bf16.msra.mxu1 %v2755_v16 }
  0x63   : > { %2520 = vmatprep.subr.bf16.mxu0 %v2757_v17  ;;  %2616 = vmatprep.subr.bf16.mxu1 %v2757_v17 }
  0x65   : > { %728 = vmatmul.mubr.bf16.vlgmr.msra.gmra.mxu0 %v3123_v18  ;;  %841 = vmatmul.mubr.bf16.vlgmr.msra.gmra.mxu1 %v3123_v18 }
  0x66   : > { %2521 = vmatpush3.bf16.msra.mxu0 %v2757_v17  ;;  %2624 = vmatpush3.bf16.msra.mxu1 %v2757_v17 }
  0x67   : > { %737 = vmatprep.mubr.bf16.mxu0 %v2863_v50  ;;  %850 = vmatprep.mubr.bf16.mxu1 %v2863_v50 }
  0x68   : > { %2522 = vmatprep.subr.bf16.mxu0 %v2759_v19  ;;  %2617 = vmatprep.subr.bf16.mxu1 %v2759_v19 }
  0x6a   : > { %2523 = vmatpush3.bf16.msra.mxu0 %v2759_v19  ;;  %2625 = vmatpush3.bf16.msra.mxu1 %v2759_v19 }
  0x6b   : > { %2524 = vmatprep.subr.bf16.mxu0 %v2761_v20  ;;  %2618 = vmatprep.subr.bf16.mxu1 %v2761_v20 }
  0x6d   : > { %738 = vmatmul.mubr.bf16.gmra.mxu0 %v3131_v21  ;;  %851 = vmatmul.mubr.bf16.gmra.mxu1 %v3131_v21 }
  0x6e   : > { %747 = vmatprep.mubr.bf16.mxu0 %v2863_v50  ;;  %860 = vmatprep.mubr.bf16.mxu1 %v2863_v50 }
  0x6f   : > { %2525 = vmatpush3.bf16.msra.mxu0 %v2761_v20  ;;  %2626 = vmatpush3.bf16.msra.mxu1 %v2761_v20 }
  0x70   : > { %2526 = vmatprep.subr.bf16.mxu0 %v2763_v22  ;;  %2619 = vmatprep.subr.bf16.mxu1 %v2763_v22 }
  0x73   : > { %2527 = vmatpush3.bf16.msra.mxu0 %v2763_v22  ;;  %2627 = vmatpush3.bf16.msra.mxu1 %v2763_v22 }
  0x74   : > { %2528 = vmatprep.subr.bf16.mxu0 %v2765_v23  ;;  %2620 = vmatprep.subr.bf16.mxu1 %v2765_v23 }
  0x75   : > { %748 = vmatmul.mubr.bf16.gmra.mxu0 %v2760_v24  ;;  %861 = vmatmul.mubr.bf16.gmra.mxu1 %v2760_v24 }
  0x76   : > { %757 = vmatprep.mubr.bf16.mxu0 %v2863_v50  ;;  %870 = vmatprep.mubr.bf16.mxu1 %v2863_v50 }
  0x77   : > { %2529 = vmatpush3.bf16.msra.mxu0 %v2765_v23  ;;  %2628 = vmatpush3.bf16.msra.mxu1 %v2765_v23 }
  0x78   : > { %2530 = vmatprep.subr.bf16.mxu0 %v2767_v25  ;;  %2621 = vmatprep.subr.bf16.mxu1 %v2767_v25 }
  0x7b   : > { %2531 = vmatpush3.bf16.msra.mxu0 %v2767_v25  ;;  %2629 = vmatpush3.bf16.msra.mxu1 %v2767_v25 }
  0x7c   : > { %2532 = vmatprep.subr.bf16.mxu0 %v2769_v26  ;;  %2622 = vmatprep.subr.bf16.mxu1 %v2769_v26 }
  0x7d   : > { %758 = vmatmul.mubr.bf16.gmra.mxu0 %v2762_v27  ;;  %871 = vmatmul.mubr.bf16.gmra.mxu1 %v2762_v27 }
  0x7e   : > { %767 = vmatprep.mubr.bf16.mxu0 %v2863_v50  ;;  %880 = vmatprep.mubr.bf16.mxu1 %v2863_v50 }
  0x7f   : > { %2533 = vmatpush3.bf16.msra.mxu0 %v2769_v26  ;;  %2630 = vmatpush3.bf16.msra.mxu1 %v2769_v26 }
  0x80   : > { %2534 = vmatprep.subr.bf16.mxu0 %v2771_v28  ;;  %2623 = vmatprep.subr.bf16.mxu1 %v2771_v28 }
  0x83   : > { %2535 = vmatpush3.bf16.msra.mxu0 %v2771_v28  ;;  %2631 = vmatpush3.bf16.msra.mxu1 %v2771_v28 }
  0x85   : > { %768 = vmatmul.mubr.bf16.gmra.mxu0 %v2764_v29  ;;  %881 = vmatmul.mubr.bf16.gmra.mxu1 %v2764_v29 }
  0x86   : > { %777 = vmatprep.mubr.bf16.mxu0 %v2863_v50  ;;  %890 = vmatprep.mubr.bf16.mxu1 %v2863_v50 }
  0x8d   : > { %778 = vmatmul.mubr.bf16.gmra.mxu0 %v2766_v30  ;;  %891 = vmatmul.mubr.bf16.gmra.mxu1 %v2766_v30 }
  0x8e   : > { %787 = vmatprep.mubr.bf16.mxu0 %v2863_v50  ;;  %900 = vmatprep.mubr.bf16.mxu1 %v2863_v50 }
  0x95   : > { %788 = vmatmul.mubr.bf16.gmra.mxu0 %v2768_v31  ;;  %901 = vmatmul.mubr.bf16.gmra.mxu1 %v2768_v31 }
  0x96   : > { %797 = vmatprep.mubr.bf16.mxu0 %v2863_v50  ;;  %910 = vmatprep.mubr.bf16.mxu1 %v2863_v50 }
  0x9d   : > { %798 = vmatmul.mubr.bf16.gmra.mxu0 %v2770_v32  ;;  %911 = vmatmul.mubr.bf16.gmra.mxu1 %v2770_v32 }
  0x9e   : > { %2536 = vmatprep.mubr.bf16.mxu0 %v3123_v18  ;;  %2544 = vmatprep.mubr.bf16.mxu1 %v2764_v29 }
  0xa5   : > { %2537 = vmatmul.mubr.bf16.vlgmr.msra.gmra.mxu0 %v3131_v21  ;;  %2545 = vmatmul.mubr.bf16.vlgmr.msra.gmra.mxu1 %v2766_v30 }
  0xa6   : > { %2540 = vmatprep.mubr.bf16.mxu0 %v2760_v24  ;;  %2548 = vmatprep.mubr.bf16.mxu1 %v2768_v31 }
  0xad   : > { %2541 = vmatmul.mubr.bf16.gmra.mxu0 %v2762_v27  ;;  %2549 = vmatmul.mubr.bf16.gmra.mxu1 %v2770_v32 }
 0x125   : > { %v729_v33 = vpop.f32.mrf.mxu0  ;;  %v842_v34 = vpop.f32.mrf.mxu1 }
 0x127   : > { %v731_v35 = vpop.f32.mrf.mxu0  ;;  %v844_v36 = vpop.f32.mrf.mxu1 }
 0x128   : > { %v2359_v37 = vpack.c.bf16 %v731_v35, %v729_v33  ;;  %v2360_v38 = vpack.c.bf16 %v844_v36, %v842_v34 }
 0x129   : > { %v733_v39 = vpop.f32.mrf.mxu0  ;;  %v846_v40 = vpop.f32.mrf.mxu1 }
 0x12a   : > { %1274 = vst [vmem:[#allocation3] sm:$0xff] %v2359_v37  ;;  %1275 = vst [vmem:[#allocation3 + $0x8] sm:$0xff] %v2360_v38 }
 0x12b   : > { %v735_v41 = vpop.f32.mrf.mxu0  ;;  %v848_v42 = vpop.f32.mrf.mxu1 }
 0x12c   : > { %v2362_v43 = vpack.c.bf16 %v735_v41, %v733_v39  ;;  %v2363_v44 = vpack.c.bf16 %v848_v42, %v846_v40 }
 0x12d   : > { %v739_v45 = vpop.f32.mrf.mxu0  ;;  %v852_v46 = vpop.f32.mrf.mxu1 }
 0x12e   : > { %1277 = vst [vmem:[#allocation3 + $0x14] sm:$0xff] %v2362_v43  ;;  %1278 = vst [vmem:[#allocation3 + $0x1c] sm:$0xff] %v2363_v44 }
 0x12f   : > { %v741_v47 = vpop.f32.mrf.mxu0  ;;  %v854_v48 = vpop.f32.mrf.mxu1 }
 0x130   : > { %v2365_v49 = vpack.c.bf16 %v741_v47, %v739_v45  ;;  %v2366_v50 = vpack.c.bf16 %v854_v48, %v852_v46 }
 0x131   : > { %v743_v51 = vpop.f32.mrf.mxu0  ;;  %v856_v52 = vpop.f32.mrf.mxu1 }
 0x132   : > { %1280 = vst [vmem:[#allocation3 + $0x28] sm:$0xff] %v2365_v49  ;;  %1281 = vst [vmem:[#allocation3 + $0x30] sm:$0xff] %v2366_v50 }
 0x133   : > { %v745_v53 = vpop.f32.mrf.mxu0  ;;  %v858_v54 = vpop.f32.mrf.mxu1 }
 0x134   : > { %v2368_v55 = vpack.c.bf16 %v745_v53, %v743_v51  ;;  %v2369_v56 = vpack.c.bf16 %v858_v54, %v856_v52 }
 0x135   : > { %v749_v57 = vpop.f32.mrf.mxu0  ;;  %v862_v58 = vpop.f32.mrf.mxu1 }
 0x136   : > { %1283 = vst [vmem:[#allocation3 + $0x3c] sm:$0xff] %v2368_v55  ;;  %1284 = vst [vmem:[#allocation3 + $0x44] sm:$0xff] %v2369_v56 }
 0x137   : > { %v751_v59 = vpop.f32.mrf.mxu0  ;;  %v864_v60 = vpop.f32.mrf.mxu1 }
 0x138   : > { %v2371_v61 = vpack.c.bf16 %v751_v59, %v749_v57  ;;  %v2372_v62 = vpack.c.bf16 %v864_v60, %v862_v58 }
 0x139   : > { %v753_v63 = vpop.f32.mrf.mxu0  ;;  %v866_v0 = vpop.f32.mrf.mxu1 }
 0x13a   : > { %1286 = vst [vmem:[#allocation3 + $0x50] sm:$0xff] %v2371_v61  ;;  %1287 = vst [vmem:[#allocation3 + $0x58] sm:$0xff] %v2372_v62 }
 0x13b   : > { %v755_v1 = vpop.f32.mrf.mxu0  ;;  %v868_v2 = vpop.f32.mrf.mxu1 }
 0x13c   : > { %v2374_v3 = vpack.c.bf16 %v755_v1, %v753_v63  ;;  %v2375_v4 = vpack.c.bf16 %v868_v2, %v866_v0 }
 0x13d   : > { %v759_v5 = vpop.f32.mrf.mxu0  ;;  %v872_v6 = vpop.f32.mrf.mxu1 }
 0x13e   : > { %1289 = vst [vmem:[#allocation3 + $0x64] sm:$0xff] %v2374_v3  ;;  %1290 = vst [vmem:[#allocation3 + $0x6c] sm:$0xff] %v2375_v4 }
 0x13f   : > { %v761_v7 = vpop.f32.mrf.mxu0  ;;  %v874_v8 = vpop.f32.mrf.mxu1 }
 0x140   : > { %v2377_v9 = vpack.c.bf16 %v761_v7, %v759_v5  ;;  %v2378_v10 = vpack.c.bf16 %v874_v8, %v872_v6 }
 0x141   : > { %v763_v11 = vpop.f32.mrf.mxu0  ;;  %v876_v12 = vpop.f32.mrf.mxu1 }
 0x142   : > { %1292 = vst [vmem:[#allocation3 + $0x78] sm:$0xff] %v2377_v9  ;;  %1293 = vst [vmem:[#allocation3 + $0x80] sm:$0xff] %v2378_v10 }
 0x143   : > { %v765_v13 = vpop.f32.mrf.mxu0  ;;  %v878_v14 = vpop.f32.mrf.mxu1 }
 0x144   : > { %v2380_v15 = vpack.c.bf16 %v765_v13, %v763_v11  ;;  %v2381_v16 = vpack.c.bf16 %v878_v14, %v876_v12 }
 0x145   : > { %v769_v17 = vpop.f32.mrf.mxu0  ;;  %v882_v18 = vpop.f32.mrf.mxu1 }
 0x146   : > { %1295 = vst [vmem:[#allocation3 + $0x8c] sm:$0xff] %v2380_v15  ;;  %1296 = vst [vmem:[#allocation3 + $0x94] sm:$0xff] %v2381_v16 }
 0x147   : > { %v771_v19 = vpop.f32.mrf.mxu0  ;;  %v884_v20 = vpop.f32.mrf.mxu1 }
 0x148   : > { %v2383_v21 = vpack.c.bf16 %v771_v19, %v769_v17  ;;  %v2384_v22 = vpack.c.bf16 %v884_v20, %v882_v18 }
 0x149   : > { %v773_v23 = vpop.f32.mrf.mxu0  ;;  %v886_v24 = vpop.f32.mrf.mxu1 }
 0x14a   : > { %1298 = vst [vmem:[#allocation3 + $0xa0] sm:$0xff] %v2383_v21  ;;  %1299 = vst [vmem:[#allocation3 + $0xa8] sm:$0xff] %v2384_v22 }
 0x14b   : > { %v775_v25 = vpop.f32.mrf.mxu0  ;;  %v888_v26 = vpop.f32.mrf.mxu1 }
 0x14c   : > { %v2386_v27 = vpack.c.bf16 %v775_v25, %v773_v23  ;;  %v2387_v28 = vpack.c.bf16 %v888_v26, %v886_v24 }
 0x14d   : > { %v779_v29 = vpop.f32.mrf.mxu0  ;;  %v892_v30 = vpop.f32.mrf.mxu1 }
 0x14e   : > { %1301 = vst [vmem:[#allocation3 + $0xb4] sm:$0xff] %v2386_v27  ;;  %1302 = vst [vmem:[#allocation3 + $0xbc] sm:$0xff] %v2387_v28 }
 0x14f   : > { %v781_v31 = vpop.f32.mrf.mxu0  ;;  %v894_v32 = vpop.f32.mrf.mxu1 }
 0x150   : > { %v2389_v33 = vpack.c.bf16 %v781_v31, %v779_v29  ;;  %v2390_v34 = vpack.c.bf16 %v894_v32, %v892_v30 }
 0x151   : > { %v783_v35 = vpop.f32.mrf.mxu0  ;;  %v896_v36 = vpop.f32.mrf.mxu1 }
 0x152   : > { %1304 = vst [vmem:[#allocation3 + $0xc8] sm:$0xff] %v2389_v33  ;;  %1305 = vst [vmem:[#allocation3 + $0xd0] sm:$0xff] %v2390_v34 }
 0x153   : > { %v785_v37 = vpop.f32.mrf.mxu0  ;;  %v898_v38 = vpop.f32.mrf.mxu1 }
 0x154   : > { %v2392_v39 = vpack.c.bf16 %v785_v37, %v783_v35  ;;  %v2393_v40 = vpack.c.bf16 %v898_v38, %v896_v36 }
 0x155   : > { %v789_v41 = vpop.f32.mrf.mxu0  ;;  %v902_v42 = vpop.f32.mrf.mxu1 }
 0x156   : > { %1307 = vst [vmem:[#allocation3 + $0xdc] sm:$0xff] %v2392_v39  ;;  %1308 = vst [vmem:[#allocation3 + $0xe4] sm:$0xff] %v2393_v40 }
 0x157   : > { %v791_v43 = vpop.f32.mrf.mxu0  ;;  %v904_v44 = vpop.f32.mrf.mxu1 }
 0x158   : > { %v2395_v45 = vpack.c.bf16 %v791_v43, %v789_v41  ;;  %v2396_v46 = vpack.c.bf16 %v904_v44, %v902_v42 }
 0x159   : > { %v793_v47 = vpop.f32.mrf.mxu0  ;;  %v906_v48 = vpop.f32.mrf.mxu1 }
 0x15a   : > { %1310 = vst [vmem:[#allocation3 + $0xf0] sm:$0xff] %v2395_v45  ;;  %1311 = vst [vmem:[#allocation3 + $0xf8] sm:$0xff] %v2396_v46 }
 0x15b   : > { %v795_v49 = vpop.f32.mrf.mxu0  ;;  %v908_v50 = vpop.f32.mrf.mxu1 }
 0x15c   : > { %v2398_v51 = vpack.c.bf16 %v795_v49, %v793_v47  ;;  %v2399_v52 = vpack.c.bf16 %v908_v50, %v906_v48 }
 0x15d   : > { %v799_v53 = vpop.f32.mrf.mxu0  ;;  %v912_v54 = vpop.f32.mrf.mxu1 }
 0x15e   : > { %1313 = vst [vmem:[#allocation3 + $0x104] sm:$0xff] %v2398_v51  ;;  %1314 = vst [vmem:[#allocation3 + $0x10c] sm:$0xff] %v2399_v52 }
 0x15f   : > { %v801_v55 = vpop.f32.mrf.mxu0  ;;  %v914_v56 = vpop.f32.mrf.mxu1 }
 0x160   : > { %v2401_v57 = vpack.c.bf16 %v801_v55, %v799_v53  ;;  %v2402_v58 = vpack.c.bf16 %v914_v56, %v912_v54 }
 0x161   : > { %v803_v59 = vpop.f32.mrf.mxu0  ;;  %v916_v60 = vpop.f32.mrf.mxu1 }
 0x162   : > { %1316 = vst [vmem:[#allocation3 + $0x118] sm:$0xff] %v2401_v57  ;;  %1317 = vst [vmem:[#allocation3 + $0x120] sm:$0xff] %v2402_v58 }
 0x163   : > { %v805_v61 = vpop.f32.mrf.mxu0  ;;  %v918_v62 = vpop.f32.mrf.mxu1 }
 0x164   : > { %v2404_v63 = vpack.c.bf16 %v805_v61, %v803_v59  ;;  %v2405_v0 = vpack.c.bf16 %v918_v62, %v916_v60 }
 0x165   : > { %v2538_v1 = vpop.f32.mrf.mxu0  ;;  %v2546_v2 = vpop.f32.mrf.mxu1 }
 0x166   : > { %1319 = vst [vmem:[#allocation3 + $0x12c] sm:$0xff] %v2404_v63  ;;  %1320 = vst [vmem:[#allocation3 + $0x134] sm:$0xff] %v2405_v0  ;;  %v2367_v3 = vpack.c.bf16 %v2538_v1, %v2538_v1  ;;  %v2391_v4 = vpack.c.bf16 %v2546_v2, %v2546_v2 }
 0x167   : > { %v955_v5 = vpop.f32.mrf.mxu0  ;;  %v987_v6 = vpop.f32.mrf.mxu1 }
 0x168   : > { %1282 = vst [vmem:[#allocation3 + $0x38] sm:$0xf] %v2367_v3  ;;  %1306 = vst [vmem:[#allocation3 + $0xd8] sm:$0xf] %v2391_v4  ;;  %v2361_v7 = vpack.c.bf16 %v955_v5, %v955_v5  ;;  %v2385_v8 = vpack.c.bf16 %v987_v6, %v987_v6 }
 0x169   : > { %v2539_v9 = vpop.f32.mrf.mxu0  ;;  %v2547_v10 = vpop.f32.mrf.mxu1 }
 0x16a   : > { %1276 = vst [vmem:[#allocation3 + $0x10] sm:$0xf] %v2361_v7  ;;  %1300 = vst [vmem:[#allocation3 + $0xb0] sm:$0xf] %v2385_v8  ;;  %v2370_v11 = vpack.c.bf16 %v2539_v9, %v2539_v9  ;;  %v2394_v12 = vpack.c.bf16 %v2547_v10, %v2547_v10 }
 0x16b   : > { %v958_v13 = vpop.f32.mrf.mxu0  ;;  %v990_v14 = vpop.f32.mrf.mxu1 }
 0x16c   : > { %1285 = vst [vmem:[#allocation3 + $0x4c] sm:$0xf] %v2370_v11  ;;  %1309 = vst [vmem:[#allocation3 + $0xec] sm:$0xf] %v2394_v12  ;;  %v2364_v15 = vpack.c.bf16 %v958_v13, %v958_v13  ;;  %v2388_v16 = vpack.c.bf16 %v990_v14, %v990_v14 }
 0x16d   : > { %v2542_v17 = vpop.f32.mrf.mxu0  ;;  %v2550_v18 = vpop.f32.mrf.mxu1 }
 0x16e   : > { %1279 = vst [vmem:[#allocation3 + $0x24] sm:$0xf] %v2364_v15  ;;  %1303 = vst [vmem:[#allocation3 + $0xc4] sm:$0xf] %v2388_v16  ;;  %v2379_v19 = vpack.c.bf16 %v2542_v17, %v2542_v17  ;;  %v2403_v20 = vpack.c.bf16 %v2550_v18, %v2550_v18 }
 0x16f   : > { %v971_v21 = vpop.f32.mrf.mxu0  ;;  %v1003_v22 = vpop.f32.mrf.mxu1 }
 0x170   : > { %1294 = vst [vmem:[#allocation3 + $0x88] sm:$0xf] %v2379_v19  ;;  %1318 = vst [vmem:[#allocation3 + $0x128] sm:$0xf] %v2403_v20  ;;  %v2373_v23 = vpack.c.bf16 %v971_v21, %v971_v21  ;;  %v2397_v24 = vpack.c.bf16 %v1003_v22, %v1003_v22 }
 0x171   : > { %v2543_v25 = vpop.f32.mrf.mxu0  ;;  %v2551_v26 = vpop.f32.mrf.mxu1 }
 0x172   : > { %1288 = vst [vmem:[#allocation3 + $0x60] sm:$0xf] %v2373_v23  ;;  %1312 = vst [vmem:[#allocation3 + $0x100] sm:$0xf] %v2397_v24  ;;  %v2382_v27 = vpack.c.bf16 %v2543_v25, %v2543_v25  ;;  %v2406_v28 = vpack.c.bf16 %v2551_v26, %v2551_v26 }
 0x173   : > { %v974_v29 = vpop.f32.mrf.mxu0  ;;  %v1006_v30 = vpop.f32.mrf.mxu1 }
 0x174   : > { %1297 = vst [vmem:[#allocation3 + $0x9c] sm:$0xf] %v2382_v27  ;;  %1321 = vst [vmem:[#allocation3 + $0x13c] sm:$0xf] %v2406_v28  ;;  %v2376_v31 = vpack.c.bf16 %v974_v29, %v974_v29  ;;  %v2400_v32 = vpack.c.bf16 %v1006_v30, %v1006_v30 }
 0x176   : > { %1291 = vst [vmem:[#allocation3 + $0x74] sm:$0xf] %v2376_v31  ;;  %1315 = vst [vmem:[#allocation3 + $0x114] sm:$0xf] %v2400_v32 }
 0x177 PF: > { %p1322_p0 = scmp.gt.s32.totalorder %s2935_s30, 0 }
 0x179   : > { %p1323_p1 = pnand %p1322_p0, %p178_p12 }
 0x17a   : > { %s2300_s7 = sshll.u32 (!%p1323_p1), %s2844_s20, 7  ;;  %s2407_s14 = sshll.u32 (!%p1323_p1), %s2844_s20, 6 }
 0x17b   : > { %1326 = sbr.rel (%p1323_p1) target bundleno = 626 (0x272), region = 106  ;;  %s1350_s15 = sshra.s32 (!%p1323_p1), %s2300_s7, 7 }
 0x17c   : > { %s2301_s16 = sshll.u32 (!%p1323_p1), %s1350_s15, 2  ;;  %s3161_s17 = scalar_lea.vmem (!%p1323_p1), [#allocation5], %s2407_s14 }
 0x17d   : > { %s3165_s18 = scalar_lea.vmem (!%p1323_p1), [#allocation3], %s2301_s16 }
 0x180   : > { %v2780_v33 = vld [vmem:[%s3161_s17] sm:$0xff]   ;;  %v2772_v35 = vld [vmem:[%s3165_s18 + $0x118] ss:$20 sps:$4 sm:$0xff]   ;;  %v2774_v37 = vld [vmem:[%s3165_s18 + $0xc8] ss:$20 sps:$4 sm:$0xff]  }
 0x181   : > { %v2781_v34 = vld [vmem:[%s3161_s17 + $0x20] sm:$0xff]   ;;  %2568 = vmatprep.mubr.bf16.mxu0 %v2780_v33  ;;  %2552 = vmatprep.subr.bf16.mxu0 %v2772_v35  ;;  %v2776_v39 = vld [vmem:[%s3165_s18 + $0x78] ss:$20 sps:$4 sm:$0xff]   ;;  %v2778_v41 = vld [vmem:[%s3165_s18 + $0x28] ss:$20 sps:$4 sm:$0xff]  }
 0x182   : > { %v2773_v36 = vld [vmem:[%s3165_s18 + $0xf0] ss:$20 sps:$4 sm:$0xff]   ;;  %2576 = vmatprep.mubr.bf16.mxu1 %v2781_v34  ;;  %2632 = vmatprep.subr.bf16.mxu1 %v2772_v35  ;;  %v2775_v38 = vld [vmem:[%s3165_s18 + $0xa0] ss:$20 sps:$4 sm:$0xff]   ;;  %v2782_v43 = vld [vmem:[%s3161_s17 + $0x8] sm:$0xff]  }
 0x183   : > { %2553 = vmatpush3.bf16.msra.mxu0 %v2772_v35  ;;  %2640 = vmatpush3.bf16.msra.mxu1 %v2772_v35  ;;  %v2777_v40 = vld [vmem:[%s3165_s18 + $0x50] ss:$20 sps:$4 sm:$0xff]   ;;  %v2779_v42 = vld [vmem:[%s3165_s18] ss:$20 sps:$4 sm:$0xff]   ;;  %v2783_v44 = vld [vmem:[%s3161_s17 + $0x28] sm:$0xff]  }
 0x184   : > { %2554 = vmatprep.subr.bf16.mxu0 %v2773_v36  ;;  %2633 = vmatprep.subr.bf16.mxu1 %v2773_v36  ;;  %v2784_v45 = vld [vmem:[%s3161_s17 + $0x10] sm:$0xff]   ;;  %v2786_v47 = vld [vmem:[%s3161_s17 + $0x18] sm:$0xff]  }
 0x185   : > { %v2785_v46 = vld [vmem:[%s3161_s17 + $0x30] sm:$0xff]   ;;  %v2787_v48 = vld [vmem:[%s3161_s17 + $0x38] sm:$0xff]  }
 0x187   : > { %2555 = vmatpush3.bf16.msra.mxu0 %v2773_v36  ;;  %2641 = vmatpush3.bf16.msra.mxu1 %v2773_v36 }
 0x188   : > { %2556 = vmatprep.subr.bf16.mxu0 %v2774_v37  ;;  %2634 = vmatprep.subr.bf16.mxu1 %v2774_v37 }
 0x18b   : > { %2557 = vmatpush3.bf16.msra.mxu0 %v2774_v37  ;;  %2642 = vmatpush3.bf16.msra.mxu1 %v2774_v37 }
 0x18c   : > { %2558 = vmatprep.subr.bf16.mxu0 %v2775_v38  ;;  %2635 = vmatprep.subr.bf16.mxu1 %v2775_v38 }
 0x18f   : > { %2559 = vmatpush3.bf16.msra.mxu0 %v2775_v38  ;;  %2643 = vmatpush3.bf16.msra.mxu1 %v2775_v38 }
 0x190   : > { %2560 = vmatprep.subr.bf16.mxu0 %v2776_v39  ;;  %2636 = vmatprep.subr.bf16.mxu1 %v2776_v39 }
 0x193   : > { %2561 = vmatpush3.bf16.msra.mxu0 %v2776_v39  ;;  %2644 = vmatpush3.bf16.msra.mxu1 %v2776_v39 }
 0x194   : > { %2562 = vmatprep.subr.bf16.mxu0 %v2777_v40  ;;  %2637 = vmatprep.subr.bf16.mxu1 %v2777_v40 }
 0x197   : > { %2563 = vmatpush3.bf16.msra.mxu0 %v2777_v40  ;;  %2645 = vmatpush3.bf16.msra.mxu1 %v2777_v40 }
 0x198   : > { %2564 = vmatprep.subr.bf16.mxu0 %v2778_v41  ;;  %2638 = vmatprep.subr.bf16.mxu1 %v2778_v41 }
 0x19b   : > { %2565 = vmatpush3.bf16.msra.mxu0 %v2778_v41  ;;  %2646 = vmatpush3.bf16.msra.mxu1 %v2778_v41 }
 0x19c   : > { %2566 = vmatprep.subr.bf16.mxu0 %v2779_v42  ;;  %2639 = vmatprep.subr.bf16.mxu1 %v2779_v42 }
 0x19f   : > { %2567 = vmatpush3.bf16.msra.mxu0 %v2779_v42  ;;  %2647 = vmatpush3.bf16.msra.mxu1 %v2779_v42 }
 0x1a2   : > { %2569 = vmatmul.mubr.bf16.vlgmr.msra.gmra.mxu0 %v2782_v43  ;;  %2577 = vmatmul.mubr.bf16.vlgmr.msra.gmra.mxu1 %v2783_v44 }
 0x1a3   : > { %2572 = vmatprep.mubr.bf16.mxu0 %v2784_v45  ;;  %2580 = vmatprep.mubr.bf16.mxu1 %v2785_v46 }
 0x1aa   : > { %2573 = vmatmul.mubr.bf16.gmra.mxu0 %v2786_v47  ;;  %2581 = vmatmul.mubr.bf16.gmra.mxu1 %v2787_v48 }
 0x262   : > { %v2570_v49 = vpop.f32.mrf.mxu0  ;;  %v2578_v50 = vpop.f32.mrf.mxu1 }
 0x263   : > { %1566 = vst [vmem:[#allocation4 + $0x58] sm:$0xff] %v2570_v49  ;;  %1574 = vst [vmem:[#allocation4 + $0x10] sm:$0xff] %v2578_v50 }
 0x264   : > { %v1500_v51 = vpop.f32.mrf.mxu0  ;;  %v1532_v52 = vpop.f32.mrf.mxu1 }
 0x265   : > { %1564 = vst [vmem:[#allocation4 + $0x30] sm:$0xff] %v1500_v51  ;;  %1572 = vst [vmem:[#allocation4 + $0x40] sm:$0xff] %v1532_v52 }
 0x266   : > { %v2571_v53 = vpop.f32.mrf.mxu0  ;;  %v2579_v54 = vpop.f32.mrf.mxu1 }
 0x267   : > { %1567 = vst [vmem:[#allocation4 + $0x18] sm:$0xff] %v2571_v53  ;;  %1575 = vst [vmem:[#allocation4 + $0x38] sm:$0xff] %v2579_v54 }
 0x268   : > { %v1503_v55 = vpop.f32.mrf.mxu0  ;;  %v1535_v56 = vpop.f32.mrf.mxu1 }
 0x269   : > { %1565 = vst [vmem:[#allocation4] sm:$0xff] %v1503_v55  ;;  %1573 = vst [vmem:[#allocation4 + $0x20] sm:$0xff] %v1535_v56 }
 0x26a   : > { %v2574_v57 = vpop.f32.mrf.mxu0  ;;  %v2582_v58 = vpop.f32.mrf.mxu1 }
 0x26b   : > { %1570 = vst [vmem:[#allocation4 + $0x8] sm:$0xff] %v2574_v57  ;;  %1578 = vst [vmem:[#allocation4 + $0x78] sm:$0xff] %v2582_v58 }
 0x26c   : > { %v1516_v59 = vpop.f32.mrf.mxu0  ;;  %v1548_v60 = vpop.f32.mrf.mxu1 }
 0x26d   : > { %1568 = vst [vmem:[#allocation4 + $0x50] sm:$0xff] %v1516_v59  ;;  %1576 = vst [vmem:[#allocation4 + $0x60] sm:$0xff] %v1548_v60 }
 0x26e   : > { %v2575_v61 = vpop.f32.mrf.mxu0  ;;  %v2583_v62 = vpop.f32.mrf.mxu1 }
 0x26f   : > { %1571 = vst [vmem:[#allocation4 + $0x48] sm:$0xff] %v2575_v61  ;;  %1579 = vst [vmem:[#allocation4 + $0x28] sm:$0xff] %v2583_v62 }
 0x270   : > { %v1519_v63 = vpop.f32.mrf.mxu0  ;;  %v1551_v0 = vpop.f32.mrf.mxu1 }
 0x271   : > { %1569 = vst [vmem:[#allocation4 + $0x68] sm:$0xff] %v1519_v63  ;;  %1577 = vst [vmem:[#allocation4 + $0x70] sm:$0xff] %v1551_v0 }
 0x272 PF: > { %p1580_p2 = scmp.eq.s32.totalorder %s2935_s30, 0 }
 0x274   : > { %p1581_p3 = pnand %p1580_p2, %p178_p12 }
 0x276   : > { %1584 = sbr.rel (%p1581_p3) target bundleno = 644 (0x284), region = 110 }
 0x27b   : > { %v2864_v1 = vmov 0.0  }
 0x27c   : > { %1586 = vst [vmem:[#allocation4 + $0x30] sm:$0xff] %v2864_v1  ;;  %1587 = vst [vmem:[#allocation4] sm:$0xff] %v2864_v1 }
 0x27d   : > { %1588 = vst [vmem:[#allocation4 + $0x58] sm:$0xff] %v2864_v1  ;;  %1589 = vst [vmem:[#allocation4 + $0x18] sm:$0xff] %v2864_v1 }
 0x27e   : > { %1590 = vst [vmem:[#allocation4 + $0x50] sm:$0xff] %v2864_v1  ;;  %1591 = vst [vmem:[#allocation4 + $0x68] sm:$0xff] %v2864_v1 }
 0x27f   : > { %1592 = vst [vmem:[#allocation4 + $0x8] sm:$0xff] %v2864_v1  ;;  %1593 = vst [vmem:[#allocation4 + $0x48] sm:$0xff] %v2864_v1 }
 0x280   : > { %1594 = vst [vmem:[#allocation4 + $0x40] sm:$0xff] %v2864_v1  ;;  %1595 = vst [vmem:[#allocation4 + $0x20] sm:$0xff] %v2864_v1 }
 0x281   : > { %1596 = vst [vmem:[#allocation4 + $0x10] sm:$0xff] %v2864_v1  ;;  %1597 = vst [vmem:[#allocation4 + $0x38] sm:$0xff] %v2864_v1 }
 0x282   : > { %1598 = vst [vmem:[#allocation4 + $0x60] sm:$0xff] %v2864_v1  ;;  %1599 = vst [vmem:[#allocation4 + $0x70] sm:$0xff] %v2864_v1 }
 0x283   : > { %1600 = vst [vmem:[#allocation4 + $0x78] sm:$0xff] %v2864_v1  ;;  %1601 = vst [vmem:[#allocation4 + $0x28] sm:$0xff] %v2864_v1 }
 0x284 PF: > { %p1602_p4 = scmp.gt.s32.totalorder %s2844_s20, 0 }
 0x286   : > { %p1603_p5 = pnand %p1602_p4, %p1322_p0 }
 0x287   : > { %s2320_s19 = sshll.u32 (!%p1603_p5), %s2844_s20, 7  ;;  %s2408_s26 = sshll.u32 (!%p1603_p5), %s2844_s20, 6 }
 0x288   : > { %1606 = sbr.rel (%p1603_p5) target bundleno = 897 (0x381), region = 114  ;;  %s1647_s27 = sshra.s32 (!%p1603_p5), %s2320_s19, 7 }
 0x289   : > { %s2321_s28 = sshll.u32 (!%p1603_p5), %s1647_s27, 2  ;;  %s3189_s29 = scalar_lea.vmem (!%p1603_p5), [#allocation5], %s2408_s26 }
 0x28a   : > { %s3193_s5 = scalar_lea.vmem (!%p1603_p5), [#allocation3], %s2321_s28 }
 0x28d   : > { %v2796_v2 = vld [vmem:[%s3189_s29] sm:$0xff]   ;;  %v2788_v4 = vld [vmem:[%s3193_s5 + $0x118] ss:$20 sps:$4 sm:$0xff]   ;;  %v2790_v6 = vld [vmem:[%s3193_s5 + $0xc8] ss:$20 sps:$4 sm:$0xff]  }
 0x28e   : > { %v2797_v3 = vld [vmem:[%s3189_s29 + $0x20] sm:$0xff]   ;;  %2600 = vmatprep.mubr.bf16.mxu0 %v2796_v2  ;;  %2584 = vmatprep.subr.bf16.mxu0 %v2788_v4  ;;  %v2792_v8 = vld [vmem:[%s3193_s5 + $0x78] ss:$20 sps:$4 sm:$0xff]   ;;  %v2794_v10 = vld [vmem:[%s3193_s5 + $0x28] ss:$20 sps:$4 sm:$0xff]  }
 0x28f   : > { %v2789_v5 = vld [vmem:[%s3193_s5 + $0xf0] ss:$20 sps:$4 sm:$0xff]   ;;  %2608 = vmatprep.mubr.bf16.mxu1 %v2797_v3  ;;  %2648 = vmatprep.subr.bf16.mxu1 %v2788_v4  ;;  %v2791_v7 = vld [vmem:[%s3193_s5 + $0xa0] ss:$20 sps:$4 sm:$0xff]   ;;  %v2798_v12 = vld [vmem:[%s3189_s29 + $0x8] sm:$0xff]  }
 0x290   : > { %2585 = vmatpush3.bf16.msra.mxu0 %v2788_v4  ;;  %2656 = vmatpush3.bf16.msra.mxu1 %v2788_v4  ;;  %v2793_v9 = vld [vmem:[%s3193_s5 + $0x50] ss:$20 sps:$4 sm:$0xff]   ;;  %v2795_v11 = vld [vmem:[%s3193_s5] ss:$20 sps:$4 sm:$0xff]   ;;  %v2799_v13 = vld [vmem:[%s3189_s29 + $0x28] sm:$0xff]  }
 0x291   : > { %2586 = vmatprep.subr.bf16.mxu0 %v2789_v5  ;;  %2649 = vmatprep.subr.bf16.mxu1 %v2789_v5  ;;  %v2800_v14 = vld [vmem:[%s3189_s29 + $0x10] sm:$0xff]   ;;  %v2802_v16 = vld [vmem:[%s3189_s29 + $0x18] sm:$0xff]   ;;  %v1616_v23 = vld [vmem:[#allocation4 + $0x40] sm:$0xff] }
 0x292   : > { %v2801_v15 = vld [vmem:[%s3189_s29 + $0x30] sm:$0xff]   ;;  %v2803_v17 = vld [vmem:[%s3189_s29 + $0x38] sm:$0xff]   ;;  %v1609_v34 = vld [vmem:[#allocation4] sm:$0xff] }
 0x293   : > { %v1610_v18 = vld [vmem:[#allocation4 + $0x58] sm:$0xff]  ;;  %v1618_v19 = vld [vmem:[#allocation4 + $0x10] sm:$0xff]  ;;  %v1617_v35 = vld [vmem:[#allocation4 + $0x20] sm:$0xff] }
 0x294   : > { %2587 = vmatpush3.bf16.msra.mxu0 %v2789_v5  ;;  %2657 = vmatpush3.bf16.msra.mxu1 %v2789_v5  ;;  %v1608_v22 = vld [vmem:[#allocation4 + $0x30] sm:$0xff]  ;;  %v1611_v28 = vld [vmem:[#allocation4 + $0x18] sm:$0xff]  ;;  %v1614_v40 = vld [vmem:[#allocation4 + $0x8] sm:$0xff] }
 0x295   : > { %2588 = vmatprep.subr.bf16.mxu0 %v2790_v6  ;;  %2650 = vmatprep.subr.bf16.mxu1 %v2790_v6  ;;  %v1619_v29 = vld [vmem:[#allocation4 + $0x38] sm:$0xff]  ;;  %v1612_v46 = vld [vmem:[#allocation4 + $0x50] sm:$0xff]  ;;  %v1620_v47 = vld [vmem:[#allocation4 + $0x60] sm:$0xff] }
 0x296   : > { %v1622_v41 = vld [vmem:[#allocation4 + $0x78] sm:$0xff]  ;;  %v1615_v52 = vld [vmem:[#allocation4 + $0x48] sm:$0xff]  ;;  %v1621_v59 = vld [vmem:[#allocation4 + $0x70] sm:$0xff] }
 0x297   : > { %v1623_v53 = vld [vmem:[#allocation4 + $0x28] sm:$0xff] }
 0x298   : > { %2589 = vmatpush3.bf16.msra.mxu0 %v2790_v6  ;;  %2658 = vmatpush3.bf16.msra.mxu1 %v2790_v6  ;;  %v1613_v58 = vld [vmem:[#allocation4 + $0x68] sm:$0xff] }
 0x299   : > { %2590 = vmatprep.subr.bf16.mxu0 %v2791_v7  ;;  %2651 = vmatprep.subr.bf16.mxu1 %v2791_v7 }
 0x29c   : > { %2591 = vmatpush3.bf16.msra.mxu0 %v2791_v7  ;;  %2659 = vmatpush3.bf16.msra.mxu1 %v2791_v7 }
 0x29d   : > { %2592 = vmatprep.subr.bf16.mxu0 %v2792_v8  ;;  %2652 = vmatprep.subr.bf16.mxu1 %v2792_v8 }
 0x2a0   : > { %2593 = vmatpush3.bf16.msra.mxu0 %v2792_v8  ;;  %2660 = vmatpush3.bf16.msra.mxu1 %v2792_v8 }
 0x2a1   : > { %2594 = vmatprep.subr.bf16.mxu0 %v2793_v9  ;;  %2653 = vmatprep.subr.bf16.mxu1 %v2793_v9 }
 0x2a4   : > { %2595 = vmatpush3.bf16.msra.mxu0 %v2793_v9  ;;  %2661 = vmatpush3.bf16.msra.mxu1 %v2793_v9 }
 0x2a5   : > { %2596 = vmatprep.subr.bf16.mxu0 %v2794_v10  ;;  %2654 = vmatprep.subr.bf16.mxu1 %v2794_v10 }
 0x2a8   : > { %2597 = vmatpush3.bf16.msra.mxu0 %v2794_v10  ;;  %2662 = vmatpush3.bf16.msra.mxu1 %v2794_v10 }
 0x2a9   : > { %2598 = vmatprep.subr.bf16.mxu0 %v2795_v11  ;;  %2655 = vmatprep.subr.bf16.mxu1 %v2795_v11 }
 0x2ac   : > { %2599 = vmatpush3.bf16.msra.mxu0 %v2795_v11  ;;  %2663 = vmatpush3.bf16.msra.mxu1 %v2795_v11 }
 0x2af   : > { %2601 = vmatmul.mubr.bf16.vlgmr.msra.gmra.mxu0 %v2798_v12  ;;  %2609 = vmatmul.mubr.bf16.vlgmr.msra.gmra.mxu1 %v2799_v13 }
 0x2b0   : > { %2604 = vmatprep.mubr.bf16.mxu0 %v2800_v14  ;;  %2612 = vmatprep.mubr.bf16.mxu1 %v2801_v15 }
 0x2b7   : > { %2605 = vmatmul.mubr.bf16.gmra.mxu0 %v2802_v16  ;;  %2613 = vmatmul.mubr.bf16.gmra.mxu1 %v2803_v17 }
 0x36f   : > { %v2602_v20 = vpop.f32.mrf.mxu0  ;;  %v2610_v21 = vpop.f32.mrf.mxu1 }
 0x370   : > { %v1862_v24 = vadd.f32 %v2602_v20, %v1610_v18  ;;  %v1870_v25 = vadd.f32 %v2610_v21, %v1618_v19 }
 0x371   : > { %v1797_v26 = vpop.f32.mrf.mxu0  ;;  %v1829_v27 = vpop.f32.mrf.mxu1 }
 0x372   : > { %1878 = vst [vmem:[#allocation4 + $0x58] sm:$0xff] %v1862_v24  ;;  %1886 = vst [vmem:[#allocation4 + $0x10] sm:$0xff] %v1870_v25  ;;  %v1860_v30 = vadd.f32 %v1797_v26, %v1608_v22  ;;  %v1868_v31 = vadd.f32 %v1829_v27, %v1616_v23 }
 0x373   : > { %v2603_v32 = vpop.f32.mrf.mxu0  ;;  %v2611_v33 = vpop.f32.mrf.mxu1 }
 0x374   : > { %1876 = vst [vmem:[#allocation4 + $0x30] sm:$0xff] %v1860_v30  ;;  %1884 = vst [vmem:[#allocation4 + $0x40] sm:$0xff] %v1868_v31  ;;  %v1863_v36 = vadd.f32 %v2603_v32, %v1611_v28  ;;  %v1871_v37 = vadd.f32 %v2611_v33, %v1619_v29 }
 0x375   : > { %v1800_v38 = vpop.f32.mrf.mxu0  ;;  %v1832_v39 = vpop.f32.mrf.mxu1 }
 0x376   : > { %1879 = vst [vmem:[#allocation4 + $0x18] sm:$0xff] %v1863_v36  ;;  %1887 = vst [vmem:[#allocation4 + $0x38] sm:$0xff] %v1871_v37  ;;  %v1861_v42 = vadd.f32 %v1800_v38, %v1609_v34  ;;  %v1869_v43 = vadd.f32 %v1832_v39, %v1617_v35 }
 0x377   : > { %v2606_v44 = vpop.f32.mrf.mxu0  ;;  %v2614_v45 = vpop.f32.mrf.mxu1 }
 0x378   : > { %1877 = vst [vmem:[#allocation4] sm:$0xff] %v1861_v42  ;;  %1885 = vst [vmem:[#allocation4 + $0x20] sm:$0xff] %v1869_v43  ;;  %v1866_v48 = vadd.f32 %v2606_v44, %v1614_v40  ;;  %v1874_v49 = vadd.f32 %v2614_v45, %v1622_v41 }
 0x379   : > { %v1813_v50 = vpop.f32.mrf.mxu0  ;;  %v1845_v51 = vpop.f32.mrf.mxu1 }
 0x37a   : > { %1882 = vst [vmem:[#allocation4 + $0x8] sm:$0xff] %v1866_v48  ;;  %1890 = vst [vmem:[#allocation4 + $0x78] sm:$0xff] %v1874_v49  ;;  %v1864_v54 = vadd.f32 %v1813_v50, %v1612_v46  ;;  %v1872_v55 = vadd.f32 %v1845_v51, %v1620_v47 }
 0x37b   : > { %v2607_v56 = vpop.f32.mrf.mxu0  ;;  %v2615_v57 = vpop.f32.mrf.mxu1 }
 0x37c   : > { %1880 = vst [vmem:[#allocation4 + $0x50] sm:$0xff] %v1864_v54  ;;  %1888 = vst [vmem:[#allocation4 + $0x60] sm:$0xff] %v1872_v55  ;;  %v1867_v60 = vadd.f32 %v2607_v56, %v1615_v52  ;;  %v1875_v61 = vadd.f32 %v2615_v57, %v1623_v53 }
 0x37d   : > { %v1816_v62 = vpop.f32.mrf.mxu0  ;;  %v1848_v63 = vpop.f32.mrf.mxu1 }
 0x37e   : > { %1883 = vst [vmem:[#allocation4 + $0x48] sm:$0xff] %v1867_v60  ;;  %1891 = vst [vmem:[#allocation4 + $0x28] sm:$0xff] %v1875_v61  ;;  %v1865_v0 = vadd.f32 %v1816_v62, %v1613_v58  ;;  %v1873_v1 = vadd.f32 %v1848_v63, %v1621_v59 }
 0x380   : > { %1881 = vst [vmem:[#allocation4 + $0x68] sm:$0xff] %v1865_v0  ;;  %1889 = vst [vmem:[#allocation4 + $0x70] sm:$0xff] %v1873_v1 }
 0x381 PF: > { %p1892_p6 = scmp.eq.s32.totalorder %s2844_s20, 4  ;;  %p1893_p7 = scmp.eq.s32.totalorder %s2848_s21, 1 }
 0x382   : > { %p1894_p8 = scmp.ne.s32.totalorder %s2848_s21, 1 }
 0x384   : > { %p1895_p9 = pnand %p1894_p8, %p1892_p6 }
 0x386   : > { %1898 = sbr.rel (%p1895_p9) target bundleno = 918 (0x396), region = 118 }
 0x38b   : > { %v1900_v2 = vld [vmem:[#allocation4 + $0x30] sm:$0xff]  ;;  %v1901_v3 = vld [vmem:[#allocation4] sm:$0xff]  ;;  %v1902_v4 = vld [vmem:[#allocation4 + $0x58] sm:$0xff] }
 0x38c   : > { %v1916_v5 = vmax.f32 %v1900_v2, 0.0  ;;  %v1917_v6 = vmax.f32 %v1901_v3, 0.0  ;;  %v1903_v7 = vld [vmem:[#allocation4 + $0x18] sm:$0xff]  ;;  %v1918_v8 = vmax.f32 %v1902_v4, 0.0  ;;  %v1904_v9 = vld [vmem:[#allocation4 + $0x50] sm:$0xff]  ;;  %v1905_v10 = vld [vmem:[#allocation4 + $0x68] sm:$0xff] }
 0x38d   : > { %v1919_v11 = vmax.f32 %v1903_v7, 0.0  ;;  %v1920_v12 = vmax.f32 %v1904_v9, 0.0  ;;  %v1921_v13 = vmax.f32 %v1905_v10, 0.0  ;;  %v1906_v14 = vld [vmem:[#allocation4 + $0x8] sm:$0xff]  ;;  %v1908_v16 = vld [vmem:[#allocation4 + $0x40] sm:$0xff]  ;;  %v1910_v22 = vld [vmem:[#allocation4 + $0x10] sm:$0xff] }
 0x38e   : > { %v1907_v15 = vld [vmem:[#allocation4 + $0x48] sm:$0xff]  ;;  %v2428_v17 = vpack.c.bf16 %v1917_v6, %v1916_v5  ;;  %v1922_v18 = vmax.f32 %v1906_v14, 0.0  ;;  %v1909_v20 = vld [vmem:[#allocation4 + $0x20] sm:$0xff]  ;;  %v1924_v21 = vmax.f32 %v1908_v16, 0.0  ;;  %v1911_v23 = vld [vmem:[#allocation4 + $0x38] sm:$0xff]  ;;  %v1926_v27 = vmax.f32 %v1910_v22, 0.0 }
 0x38f   : > { %v1923_v19 = vmax.f32 %v1907_v15, 0.0  ;;  %v2433_v24 = vpack.c.bf16 %v1919_v11, %v1918_v8  ;;  %v2438_v25 = vpack.c.bf16 %v1921_v13, %v1920_v12  ;;  %v1925_v26 = vmax.f32 %v1909_v20, 0.0  ;;  %v1912_v28 = vld [vmem:[#allocation4 + $0x60] sm:$0xff]  ;;  %v1913_v29 = vld [vmem:[#allocation4 + $0x70] sm:$0xff]  ;;  %v1914_v30 = vld [vmem:[#allocation4 + $0x78] sm:$0xff] }
 0x390   : > { %2429 = vst [vmem:[#allocation2] sm:$0xff] %v2428_v17   ;;  %v1927_v32 = vmax.f32 %v1911_v23, 0.0  ;;  %v1928_v33 = vmax.f32 %v1912_v28, 0.0  ;;  %v1929_v34 = vmax.f32 %v1913_v29, 0.0  ;;  %v1915_v35 = vld [vmem:[#allocation4 + $0x28] sm:$0xff]  ;;  %v1930_v37 = vmax.f32 %v1914_v30, 0.0 }
 0x391   : > { %v2443_v31 = vpack.c.bf16 %v1923_v19, %v1922_v18  ;;  %2465 = vst [vmem:[#allocation2 + $0x8] sm:$0xff] %v2433_v24   ;;  %2466 = vst [vmem:[#allocation2 + $0x10] sm:$0xff] %v2438_v25   ;;  %v2448_v36 = vpack.c.bf16 %v1925_v26, %v1924_v21  ;;  %v1931_v38 = vmax.f32 %v1915_v35, 0.0 }
 0x392   : > { %v2453_v39 = vpack.c.bf16 %v1927_v32, %v1926_v27  ;;  %v2458_v40 = vpack.c.bf16 %v1929_v34, %v1928_v33 }
 0x393   : > { %2467 = vst [vmem:[#allocation2 + $0x18] sm:$0xff] %v2443_v31   ;;  %2468 = vst [vmem:[#allocation2 + $0x20] sm:$0xff] %v2448_v36   ;;  %v2463_v41 = vpack.c.bf16 %v1931_v38, %v1930_v37 }
 0x394   : > { %2469 = vst [vmem:[#allocation2 + $0x28] sm:$0xff] %v2453_v39   ;;  %2470 = vst [vmem:[#allocation2 + $0x30] sm:$0xff] %v2458_v40  }
 0x395   : > { %2471 = vst [vmem:[#allocation2 + $0x38] sm:$0xff] %v2463_v41  }
 0x396 PF: > { %p2016_p10 = pnand %p1893_p7, %p1892_p6 }
 0x398   : > { %2019 = sbr.rel (%p2016_p10) target bundleno = 936 (0x3a8), region = 122 }
 0x39d   : > { %v2021_v42 = vld [vmem:[#allocation4 + $0x30] sm:$0xff]  ;;  %v2022_v43 = vld [vmem:[#allocation4] sm:$0xff]  ;;  %v2023_v44 = vld [vmem:[#allocation4 + $0x58] sm:$0xff] }
 0x39e   : > { %v2037_v45 = vmax.f32 %v2021_v42, 0.0  ;;  %v2038_v46 = vmax.f32 %v2022_v43, 0.0  ;;  %v2039_v47 = vmax.f32 %v2023_v44, 0.0  ;;  %v2024_v48 = vld [vmem:[#allocation4 + $0x18] sm:$0xff]  ;;  %v2025_v49 = vld [vmem:[#allocation4 + $0x50] sm:$0xff]  ;;  %v2026_v50 = vld [vmem:[#allocation4 + $0x68] sm:$0xff] }
 0x39f   : > { %v2040_v51 = vmax.f32 %v2024_v48, 0.0  ;;  %v2041_v52 = vmax.f32 %v2025_v49, 0.0  ;;  %v2042_v53 = vmax.f32 %v2026_v50, 0.0  ;;  %v2027_v54 = vld [vmem:[#allocation4 + $0x8] sm:$0xff]  ;;  %v2029_v56 = vld [vmem:[#allocation4 + $0x40] sm:$0xff]  ;;  %v2031_v61 = vld [vmem:[#allocation4 + $0x10] sm:$0xff] }
 0x3a0   : > { %v2028_v55 = vld [vmem:[#allocation4 + $0x48] sm:$0xff]  ;;  %2053 = vst [vmem:[%s3285_s4] sm:$0xff] %v2037_v45  ;;  %2054 = vst [vmem:[%s3285_s4 + $0x8] sm:$0xff] %v2038_v46  ;;  %v2043_v57 = vmax.f32 %v2027_v54, 0.0  ;;  %v2045_v59 = vmax.f32 %v2029_v56, 0.0  ;;  %v2030_v60 = vld [vmem:[#allocation4 + $0x20] sm:$0xff]  ;;  %v2047_v0 = vmax.f32 %v2031_v61, 0.0 }
 0x3a1   : > { %2055 = vst [vmem:[%s3285_s4 + $0x10] sm:$0xff] %v2039_v47  ;;  %v2044_v58 = vmax.f32 %v2028_v55, 0.0  ;;  %v2032_v62 = vld [vmem:[#allocation4 + $0x38] sm:$0xff]  ;;  %2056 = vst [vmem:[%s3285_s4 + $0x18] sm:$0xff] %v2040_v51  ;;  %v2046_v63 = vmax.f32 %v2030_v60, 0.0  ;;  %v2033_v2 = vld [vmem:[#allocation4 + $0x60] sm:$0xff] }
 0x3a2   : > { %2057 = vst [vmem:[%s3285_s4 + $0x20] sm:$0xff] %v2041_v52  ;;  %2058 = vst [vmem:[%s3285_s4 + $0x28] sm:$0xff] %v2042_v53  ;;  %v2048_v1 = vmax.f32 %v2032_v62, 0.0  ;;  %v2034_v3 = vld [vmem:[#allocation4 + $0x70] sm:$0xff]  ;;  %v2035_v4 = vld [vmem:[#allocation4 + $0x78] sm:$0xff]  ;;  %v2049_v5 = vmax.f32 %v2033_v2, 0.0 }
 0x3a3   : > { %2059 = vst [vmem:[%s3285_s4 + $0x30] sm:$0xff] %v2043_v57  ;;  %2060 = vst [vmem:[%s3285_s4 + $0x38] sm:$0xff] %v2044_v58  ;;  %v2050_v6 = vmax.f32 %v2034_v3, 0.0  ;;  %v2051_v7 = vmax.f32 %v2035_v4, 0.0  ;;  %v2036_v8 = vld [vmem:[#allocation4 + $0x28] sm:$0xff] }
 0x3a4   : > { %2061 = vst [vmem:[%s3285_s4 + $0x40] sm:$0xff] %v2045_v59  ;;  %2062 = vst [vmem:[%s3285_s4 + $0x48] sm:$0xff] %v2046_v63  ;;  %v2052_v9 = vmax.f32 %v2036_v8, 0.0 }
 0x3a5   : > { %2063 = vst [vmem:[%s3285_s4 + $0x50] sm:$0xff] %v2047_v0  ;;  %2064 = vst [vmem:[%s3285_s4 + $0x58] sm:$0xff] %v2048_v1 }
 0x3a6   : > { %2065 = vst [vmem:[%s3285_s4 + $0x60] sm:$0xff] %v2049_v5  ;;  %2066 = vst [vmem:[%s3285_s4 + $0x68] sm:$0xff] %v2050_v6 }
 0x3a7   : > { %2067 = vst [vmem:[%s3285_s4 + $0x70] sm:$0xff] %v2051_v7  ;;  %2068 = vst [vmem:[%s3285_s4 + $0x78] sm:$0xff] %v2052_v9 }
 0x3a8 PF: > { %s20_s23 = sadd.s32 1, %s2860_s23   ;;  %s3286_s20 = smov %s2852_s22 }
 0x3a9   : > { %p17_p11 = scmp.ge.s32.totalorder %s20_s23, 12   ;;  %s3287_s21 = smov %s2856_s0 }
 0x3aa   : > { %s3288_s22 = smov %s3291_s24  ;;  %s3289_s0 = smov %s3295_s25 }
 0x3ab   :  { %19 = sbr.rel (!%p17_p11) target bundleno = 18 (0x12), region = 178 }

</bundles_post_ra>
